<compile_context>
chip_gen: v7x
topology: tpu7x:2x2x1
jax: 0.10.0
libtpu: 0.0.40
codegen_flags: <defaults>
</compile_context>

<pallas_src>
import functools

import numpy as np
import jax
import jax.numpy as jnp
from jax import lax
from jax.experimental import pallas as pl
from jax.experimental.pallas import tpu as pltpu


_TARGET_BLOCK_BYTES = 1 << 20   # aim for ~1 MiB of field data per grid step


# ------------------------------- kernel ------------------------------------

def _make_kernel(M, S, Cc, inv_dx):
    """M = BT*S sublane rows per block (BT batch elements stacked along S)."""

    def kernel(c0_ref, c1_ref, d_ref, vx_ref, vy_ref, vz_ref, mhd_ref, ew_ref,
               out_ref):
        # ---- hoisted edge weights (built once, reused by every diff) -------
        # S-direction weights (1/dx, zero at each batch element's first/last
        # S-row) from a tiny (M,1) iota; the flattened R/C-direction weights
        # (1/dy, 1/dz folded in) arrive precomputed in the small `ew` input.
        s_idx = lax.broadcasted_iota(jnp.int32, (M, 1), 0) % S
        w_sf = jnp.where(s_idx < S - 1, inv_dx, 0.0).astype(jnp.float32)  # (M,1)
        w_sb = jnp.where(s_idx > 0, inv_dx, 0.0).astype(jnp.float32)      # (M,1)
        w_rf = ew_ref[0:1, :]   # (1,F): 1/dy where r < R-1 else 0
        w_rb = ew_ref[1:2, :]   # (1,F): 1/dy where r > 0   else 0
        w_cf = ew_ref[2:3, :]   # (1,F): 1/dz where c < C-1 else 0
        w_cb = ew_ref[3:4, :]   # (1,F): 1/dz where c > 0   else 0

        D = d_ref[...]
        Vx = vx_ref[...]
        Vy = vy_ref[...]
        Vz = vz_ref[...]
        mhd = mhd_ref[...]            # mask * SetBC-interior * (0.5*dt)

        # Upwind sign selectors, shared by the C^k and C^{k+1} evaluations.
        # TODO(synk): Upwind class source not provided; V>0 -> backward diff.
        sx = Vx > 0.0
        sy = Vy > 0.0
        sz = Vz > 0.0

        # result[i] = a[i+k] / a[i-k] along `axis`; wrapped entries (including
        # the cross-batch rows inside an aggregated block) are zeroed by the
        # edge weights, so an XLU rotate is exact.  Both the sublane (axis 0)
        # and lane (axis 1) shifts use pltpu.roll -> off the VALU/ld-st slots.
        def nxt(a, axis, k):
            return pltpu.roll(a, a.shape[axis] - k, axis)

        def prv(a, axis, k):
            return pltpu.roll(a, k, axis)

        # Forward / backward differences; the weights already contain 1/h and
        # the zero boundary rows/columns.
        d_sf = lambda a: (nxt(a, 0, 1) - a) * w_sf
        d_sb = lambda a: (a - prv(a, 0, 1)) * w_sb
        d_rf = lambda a: (nxt(a, 1, Cc) - a) * w_rf
        d_rb = lambda a: (a - prv(a, 1, Cc)) * w_rb
        d_cf = lambda a: (nxt(a, 1, 1) - a) * w_cf
        d_cb = lambda a: (a - prv(a, 1, 1)) * w_cb

        def rhs(Cf):
            """div(D grad C) - V . grad_upwind C  (unmasked, unscaled)."""
            # shared stencils (CSE'd between diffusion and advection terms)
            cs_f = d_sf(Cf); cr_f = d_rf(Cf); cc_f = d_cf(Cf)
            cs_b = d_sb(Cf); cr_b = d_rb(Cf); cc_b = d_cb(Cf)
            diffusion = d_sb(D * cs_f) + d_rb(D * cr_f) + d_cb(D * cc_f)
            advect = (Vx * jnp.where(sx, cs_b, cs_f)
                      + Vy * jnp.where(sy, cr_b, cr_f)
                      + Vz * jnp.where(sz, cc_b, cc_f))
            return diffusion - advect     # negation folded into the subtract

        C0 = c0_ref[...]
        C1 = c1_ref[...]
        # mhd applied once to the summed rhs (one vmul instead of two).
        resid = (C1 - C0) - mhd * (rhs(C0) + rhs(C1))
        out_ref[...] = jnp.sum(resid * resid, keepdims=True)

    return kernel


# ------------------------------- wrapper ------------------------------------

def _pick_bt(B, S, cap):
    """Largest divisor BT of B with BT <= cap and sublane-aligned blocks."""
    cap = max(1, min(cap, B))
    for bt in range(cap, 0, -1):
        if B % bt == 0 and (bt * S) % 8 == 0:
            return bt
    # No sublane-aligned partial block exists: fall back to one block that
    # spans the whole batch (block == full array is always a legal tiling).
    return B


@functools.partial(jax.jit, static_argnames=("data_spacing", "dt"))
def conserv_loss(batch_Ct, D, Vx, Vy, Vz, mask,
                 data_spacing=(1.0, 1.0, 1.0), dt=0.1):
    """ConservLoss.forward: mean |C1 - C0 - 0.5*dt*(PDE(C0)+PDE(C1))|^2."""
    B, S, R, Cc, _ = batch_Ct.shape
    F = R * Cc
    inv_dx, inv_dy, inv_dz = (1.0 / h for h in data_spacing)

    # ---- generation-aware block sizing (v7x: 64 MiB VMEM/TC; v5e/v6e: 128) --
    try:
        vmem_cap = int(pltpu.get_tpu_info().vmem_capacity_bytes)
    except Exception:
        vmem_cap = 64 * 1024 * 1024          # conservative (v7x per-TC)
    vmem_limit = int(min(vmem_cap * 3 // 4, 100 * 1024 * 1024))

    per_batch_bytes = 7 * S * F * 4          # 7 f32 fields per batch element
    # 7 double-buffered input streams must fit in ~half the scoped limit.
    bt_vmem = max(1, (vmem_limit // 2) // (2 * per_batch_bytes))
    bt_target = max(1, -(-_TARGET_BLOCK_BYTES // per_batch_bytes))   # ceil div
    cap = min(bt_vmem, bt_target)
    if B >= 2:
        cap = min(cap, B // 2)   # keep >= 2 parallel grid steps (v7x: 2 TCs)
    BT = _pick_bt(B, S, cap)
    G = B // BT
    M = BT * S

    # Lane-dense layout: flatten (B, S, R, Cc) -> (B*S, F), F = R*Cc.
    C0 = batch_Ct[..., 0].reshape(B * S, F)
    C1 = batch_Ct[..., 1].reshape(B * S, F)
    Df = D.reshape(B * S, F)
    Vxf = Vx.reshape(B * S, F)
    Vyf = Vy.reshape(B * S, F)
    Vzf = Vz.reshape(B * S, F)

    # SetBC interior * mask * 0.5*dt, folded once here (removed from kernel).
    # TODO(synk): original SetBC / contour source was not provided; a
    # zero-Dirichlet boundary is used here.
    s_i, r_i, c_i = np.arange(S), np.arange(R), np.arange(Cc)
    interior = (((s_i > 0) & (s_i < S - 1))[:, None, None]
                & ((r_i > 0) & (r_i < R - 1))[None, :, None]
                & ((c_i > 0) & (c_i < Cc - 1))[None, None, :])
    mhd = (mask * jnp.asarray(interior, jnp.float32)
           * (0.5 * dt)).reshape(B * S, F)

    # Flattened-axis (R / C direction) edge weights with 1/h folded in.
    rr, cc = np.meshgrid(np.arange(R), np.arange(Cc), indexing="ij")
    ew = np.zeros((4, F), np.float32)
    ew[0] = np.where(rr < R - 1, inv_dy, 0.0).reshape(F)
    ew[1] = np.where(rr > 0, inv_dy, 0.0).reshape(F)
    ew[2] = np.where(cc < Cc - 1, inv_dz, 0.0).reshape(F)
    ew[3] = np.where(cc > 0, inv_dz, 0.0).reshape(F)
    ew = jnp.asarray(ew)

    vol_spec = pl.BlockSpec((M, F), lambda g: (g, 0))
    ew_spec = pl.BlockSpec((4, F), lambda g: (0, 0))

    partials = pl.pallas_call(
        _make_kernel(M, S, Cc, inv_dx),
        out_shape=jax.ShapeDtypeStruct((G, 1, 1), jnp.float32),
        grid_spec=pltpu.PrefetchScalarGridSpec(
            num_scalar_prefetch=0,
            grid=(G,),
            in_specs=[vol_spec] * 7 + [ew_spec],
            out_specs=pl.BlockSpec((None, 1, 1), lambda g: (g, 0, 0)),
        ),
        compiler_params=pltpu.CompilerParams(
            dimension_semantics=("parallel",),   # megacore over blocks (v7x)
            vmem_limit_bytes=vmem_limit),
    )(C0, C1, Df, Vxf, Vyf, Vzf, mhd, ew)

    return jnp.sum(partials) / (B * S * R * Cc)


# --------------------------- plain-JAX reference ----------------------------

def _fwd_diff(a, axis, h):
    n = a.shape[axis]
    shifted = jnp.roll(a, -1, axis=axis)
    idx = lax.broadcasted_iota(jnp.int32, a.shape, axis)
    return jnp.where(idx < n - 1, (shifted - a) / h, 0.0)


def _bwd_diff(a, axis, h):
    shifted = jnp.roll(a, 1, axis=axis)
    idx = lax.broadcasted_iota(jnp.int32, a.shape, axis)
    return jnp.where(idx > 0, (a - shifted) / h, 0.0)


def _pde_rhs_ref(C, D, Vx, Vy, Vz, msk, spacing):
    dx, dy, dz = spacing
    diff = (_bwd_diff(D * _fwd_diff(C, 0, dx), 0, dx)
            + _bwd_diff(D * _fwd_diff(C, 1, dy), 1, dy)
            + _bwd_diff(D * _fwd_diff(C, 2, dz), 2, dz))
    cx = jnp.where(Vx > 0, _bwd_diff(C, 0, dx), _fwd_diff(C, 0, dx))
    cy = jnp.where(Vy > 0, _bwd_diff(C, 1, dy), _fwd_diff(C, 1, dy))
    cz = jnp.where(Vz > 0, _bwd_diff(C, 2, dz), _fwd_diff(C, 2, dz))
    rhs = diff - (Vx * cx + Vy * cy + Vz * cz)
    S, R, Cc = C.shape
    i = lax.broadcasted_iota(jnp.int32, C.shape, 0)
    j = lax.broadcasted_iota(jnp.int32, C.shape, 1)
    k = lax.broadcasted_iota(jnp.int32, C.shape, 2)
    interior = ((i > 0) & (i < S - 1) & (j > 0) & (j < R - 1)
                & (k > 0) & (k < Cc - 1))
    return jnp.where(interior, rhs, 0.0) * msk


def reference_loss(batch_Ct, D, Vx, Vy, Vz, mask,
                   data_spacing=(1.0, 1.0, 1.0), dt=0.1):
    C0 = batch_Ct[..., 0]
    C1 = batch_Ct[..., 1]

    def per_batch(c0, c1, d, vx, vy, vz, m):
        dC = 0.5 * (_pde_rhs_ref(c0, d, vx, vy, vz, m, data_spacing)
                    + _pde_rhs_ref(c1, d, vx, vy, vz, m, data_spacing)) * dt
        return jnp.sum((c1 - c0 - dC) ** 2)

    total = jnp.sum(jax.vmap(per_batch)(C0, C1, D, Vx, Vy, Vz, mask))
    return total / C0.size


# --------------------------------- main -------------------------------------

if __name__ == "__main__":
    key = jax.random.PRNGKey(0)
    B, S, R, Cc = 2, 8, 16, 16
    k1, k2, k3, k4, k5, k6 = jax.random.split(key, 6)

    batch_Ct = jax.random.uniform(k1, (B, S, R, Cc, 2), jnp.float32)
    D = jax.random.uniform(k2, (B, S, R, Cc), jnp.float32) * 0.1
    Vx = jax.random.normal(k3, (B, S, R, Cc), jnp.float32) * 0.1
    Vy = jax.random.normal(k4, (B, S, R, Cc), jnp.float32) * 0.1
    Vz = jax.random.normal(k5, (B, S, R, Cc), jnp.float32) * 0.1
    mask = (jax.random.uniform(k6, (B, S, R, Cc)) > 0.2).astype(jnp.float32)

    spacing = (0.5, 2.0, 4.0)   # non-unit spacing with exact reciprocals

    loss = conserv_loss(batch_Ct, D, Vx, Vy, Vz, mask, data_spacing=spacing)
    loss = jax.block_until_ready(loss)

    ref = reference_loss(batch_Ct, D, Vx, Vy, Vz, mask, data_spacing=spacing)
    ref = jax.block_until_ready(ref)

    assert np.allclose(np.asarray(loss), np.asarray(ref),
                       rtol=1e-4, atol=1e-6), (loss, ref)
    print("KERNEL_OK")
</pallas_src>

<mosaic_0001>
module attributes {stable_mosaic.version = 11 : i64} {
  func.func @kernel(%arg0: i32, %arg1: memref<8x256xf32, #tpu.memory_space<vmem>>, %arg2: memref<8x256xf32, #tpu.memory_space<vmem>>, %arg3: memref<8x256xf32, #tpu.memory_space<vmem>>, %arg4: memref<8x256xf32, #tpu.memory_space<vmem>>, %arg5: memref<8x256xf32, #tpu.memory_space<vmem>>, %arg6: memref<8x256xf32, #tpu.memory_space<vmem>>, %arg7: memref<8x256xf32, #tpu.memory_space<vmem>>, %arg8: memref<4x256xf32, #tpu.memory_space<vmem>>, %arg9: memref<1x1x1xf32, #tpu.memory_space<vmem>>) attributes {dimension_semantics = [#tpu.dimension_semantics<parallel>], iteration_bounds = array<i64: 2>, scalar_prefetch = 0 : i64, scratch_operands = 0 : i64, tpu.core_type = #tpu.core_type<tc>, window_params = [{transform_indices = @transform_0, window_bounds = array<i64: 8, 256>}, {transform_indices = @transform_1, window_bounds = array<i64: 8, 256>}, {transform_indices = @transform_2, window_bounds = array<i64: 8, 256>}, {transform_indices = @transform_3, window_bounds = array<i64: 8, 256>}, {transform_indices = @transform_4, window_bounds = array<i64: 8, 256>}, {transform_indices = @transform_5, window_bounds = array<i64: 8, 256>}, {transform_indices = @transform_6, window_bounds = array<i64: 8, 256>}, {pipeline_mode = #tpu.pipeline_mode<synchronous>, transform_indices = @transform_7, window_bounds = array<i64: 4, 256>}, {transform_indices = @transform_8, window_bounds = array<i64: 1, 1, 1>}]} {
    %0 = tpu.iota {dimensions = array<i32: 0>} : vector<8x1xi32>
    %c8_i32 = arith.constant 8 : i32
    %c0_i32 = arith.constant 0 : i32
    %1 = arith.cmpi eq, %c8_i32, %c0_i32 : i32
    %c1_i32 = arith.constant 1 : i32
    %2 = arith.select %1, %c1_i32, %c8_i32 : i32
    %3 = vector.broadcast %2 : i32 to vector<8x1xi32>
    %4 = arith.remsi %0, %3 : vector<8x1xi32>
    %c0_i32_0 = arith.constant 0 : i32
    %5 = vector.broadcast %c0_i32_0 : i32 to vector<8x1xi32>
    %6 = arith.cmpi ne, %4, %5 : vector<8x1xi32>
    %c0_i32_1 = arith.constant 0 : i32
    %7 = vector.broadcast %c0_i32_1 : i32 to vector<8x1xi32>
    %8 = arith.cmpi slt, %4, %7 : vector<8x1xi32>
    %c0_i32_2 = arith.constant 0 : i32
    %9 = arith.cmpi slt, %2, %c0_i32_2 : i32
    %10 = vector.broadcast %9 : i1 to vector<8x1xi1>
    %11 = vector.broadcast %10 : vector<8x1xi1> to vector<8x1xi1>
    %12 = arith.xori %8, %11 : vector<8x1xi1>
    %13 = arith.andi %12, %6 : vector<8x1xi1>
    %14 = vector.broadcast %2 : i32 to vector<8x1xi32>
    %15 = arith.addi %4, %14 : vector<8x1xi32>
    %16 = arith.select %13, %15, %4 : vector<8x1xi1>, vector<8x1xi32>
    %c7_i32 = arith.constant 7 : i32
    %17 = vector.broadcast %c7_i32 : i32 to vector<8x1xi32>
    %18 = arith.cmpi slt, %16, %17 : vector<8x1xi32>
    %cst = arith.constant 2.000000e+00 : f32
    %cst_3 = arith.constant 0.000000e+00 : f32
    %19 = vector.broadcast %cst : f32 to vector<8x1xf32>
    %20 = vector.broadcast %cst_3 : f32 to vector<8x1xf32>
    %21 = arith.select %18, %19, %20 : vector<8x1xi1>, vector<8x1xf32>
    %c0_i32_4 = arith.constant 0 : i32
    %22 = vector.broadcast %c0_i32_4 : i32 to vector<8x1xi32>
    %23 = arith.cmpi sgt, %16, %22 : vector<8x1xi32>
    %cst_5 = arith.constant 2.000000e+00 : f32
    %cst_6 = arith.constant 0.000000e+00 : f32
    %24 = vector.broadcast %cst_5 : f32 to vector<8x1xf32>
    %25 = vector.broadcast %cst_6 : f32 to vector<8x1xf32>
    %26 = arith.select %23, %24, %25 : vector<8x1xi1>, vector<8x1xf32>
    %c0 = arith.constant 0 : index
    %c0_7 = arith.constant 0 : index
    %27 = vector.load %arg8[%c0, %c0_7] : memref<4x256xf32, #tpu.memory_space<vmem>>, vector<1x256xf32>
    %c1 = arith.constant 1 : index
    %c0_8 = arith.constant 0 : index
    %28 = vector.load %arg8[%c1, %c0_8] : memref<4x256xf32, #tpu.memory_space<vmem>>, vector<1x256xf32>
    %c2 = arith.constant 2 : index
    %c0_9 = arith.constant 0 : index
    %29 = vector.load %arg8[%c2, %c0_9] : memref<4x256xf32, #tpu.memory_space<vmem>>, vector<1x256xf32>
    %c3 = arith.constant 3 : index
    %c0_10 = arith.constant 0 : index
    %30 = vector.load %arg8[%c3, %c0_10] : memref<4x256xf32, #tpu.memory_space<vmem>>, vector<1x256xf32>
    %c0_11 = arith.constant 0 : index
    %c0_12 = arith.constant 0 : index
    %31 = vector.load %arg3[%c0_11, %c0_12] : memref<8x256xf32, #tpu.memory_space<vmem>>, vector<8x256xf32>
    %c0_13 = arith.constant 0 : index
    %c0_14 = arith.constant 0 : index
    %32 = vector.load %arg4[%c0_13, %c0_14] : memref<8x256xf32, #tpu.memory_space<vmem>>, vector<8x256xf32>
    %c0_15 = arith.constant 0 : index
    %c0_16 = arith.constant 0 : index
    %33 = vector.load %arg5[%c0_15, %c0_16] : memref<8x256xf32, #tpu.memory_space<vmem>>, vector<8x256xf32>
    %c0_17 = arith.constant 0 : index
    %c0_18 = arith.constant 0 : index
    %34 = vector.load %arg6[%c0_17, %c0_18] : memref<8x256xf32, #tpu.memory_space<vmem>>, vector<8x256xf32>
    %c0_19 = arith.constant 0 : index
    %c0_20 = arith.constant 0 : index
    %35 = vector.load %arg7[%c0_19, %c0_20] : memref<8x256xf32, #tpu.memory_space<vmem>>, vector<8x256xf32>
    %cst_21 = arith.constant 0.000000e+00 : f32
    %36 = vector.broadcast %cst_21 : f32 to vector<8x256xf32>
    %37 = arith.cmpf ogt, %32, %36 : vector<8x256xf32>
    %cst_22 = arith.constant 0.000000e+00 : f32
    %38 = vector.broadcast %cst_22 : f32 to vector<8x256xf32>
    %39 = arith.cmpf ogt, %33, %38 : vector<8x256xf32>
    %cst_23 = arith.constant 0.000000e+00 : f32
    %40 = vector.broadcast %cst_23 : f32 to vector<8x256xf32>
    %41 = arith.cmpf ogt, %34, %40 : vector<8x256xf32>
    %c0_24 = arith.constant 0 : index
    %c0_25 = arith.constant 0 : index
    %42 = vector.load %arg1[%c0_24, %c0_25] : memref<8x256xf32, #tpu.memory_space<vmem>>, vector<8x256xf32>
    %c0_26 = arith.constant 0 : index
    %c0_27 = arith.constant 0 : index
    %43 = vector.load %arg2[%c0_26, %c0_27] : memref<8x256xf32, #tpu.memory_space<vmem>>, vector<8x256xf32>
    %44 = arith.subf %43, %42 : vector<8x256xf32>
    %c7_i32_28 = arith.constant 7 : i32
    %45 = tpu.dynamic_rotate %42 by %c7_i32_28 dim 0 : vector<8x256xf32>, i32 -> vector<8x256xf32>
    %46 = arith.subf %45, %42 : vector<8x256xf32>
    %47 = vector.broadcast %21 : vector<8x1xf32> to vector<8x256xf32>
    %48 = arith.mulf %46, %47 : vector<8x256xf32>
    %c240_i32 = arith.constant 240 : i32
    %49 = tpu.dynamic_rotate %42 by %c240_i32 dim 1 : vector<8x256xf32>, i32 -> vector<8x256xf32>
    %50 = arith.subf %49, %42 : vector<8x256xf32>
    %51 = vector.broadcast %27 : vector<1x256xf32> to vector<8x256xf32>
    %52 = arith.mulf %50, %51 : vector<8x256xf32>
    %c255_i32 = arith.constant 255 : i32
    %53 = tpu.dynamic_rotate %42 by %c255_i32 dim 1 : vector<8x256xf32>, i32 -> vector<8x256xf32>
    %54 = arith.subf %53, %42 : vector<8x256xf32>
    %55 = vector.broadcast %29 : vector<1x256xf32> to vector<8x256xf32>
    %56 = arith.mulf %54, %55 : vector<8x256xf32>
    %c1_i32_29 = arith.constant 1 : i32
    %57 = tpu.dynamic_rotate %42 by %c1_i32_29 dim 0 : vector<8x256xf32>, i32 -> vector<8x256xf32>
    %58 = arith.subf %42, %57 : vector<8x256xf32>
    %59 = vector.broadcast %26 : vector<8x1xf32> to vector<8x256xf32>
    %60 = arith.mulf %58, %59 : vector<8x256xf32>
    %c16_i32 = arith.constant 16 : i32
    %61 = tpu.dynamic_rotate %42 by %c16_i32 dim 1 : vector<8x256xf32>, i32 -> vector<8x256xf32>
    %62 = arith.subf %42, %61 : vector<8x256xf32>
    %63 = vector.broadcast %28 : vector<1x256xf32> to vector<8x256xf32>
    %64 = arith.mulf %62, %63 : vector<8x256xf32>
    %c1_i32_30 = arith.constant 1 : i32
    %65 = tpu.dynamic_rotate %42 by %c1_i32_30 dim 1 : vector<8x256xf32>, i32 -> vector<8x256xf32>
    %66 = arith.subf %42, %65 : vector<8x256xf32>
    %67 = vector.broadcast %30 : vector<1x256xf32> to vector<8x256xf32>
    %68 = arith.mulf %66, %67 : vector<8x256xf32>
    %69 = arith.mulf %31, %48 : vector<8x256xf32>
    %c1_i32_31 = arith.constant 1 : i32
    %70 = tpu.dynamic_rotate %69 by %c1_i32_31 dim 0 : vector<8x256xf32>, i32 -> vector<8x256xf32>
    %71 = arith.subf %69, %70 : vector<8x256xf32>
    %72 = vector.broadcast %26 : vector<8x1xf32> to vector<8x256xf32>
    %73 = arith.mulf %71, %72 : vector<8x256xf32>
    %74 = arith.mulf %31, %52 : vector<8x256xf32>
    %c16_i32_32 = arith.constant 16 : i32
    %75 = tpu.dynamic_rotate %74 by %c16_i32_32 dim 1 : vector<8x256xf32>, i32 -> vector<8x256xf32>
    %76 = arith.subf %74, %75 : vector<8x256xf32>
    %77 = vector.broadcast %28 : vector<1x256xf32> to vector<8x256xf32>
    %78 = arith.mulf %76, %77 : vector<8x256xf32>
    %79 = arith.addf %73, %78 : vector<8x256xf32>
    %80 = arith.mulf %31, %56 : vector<8x256xf32>
    %c1_i32_33 = arith.constant 1 : i32
    %81 = tpu.dynamic_rotate %80 by %c1_i32_33 dim 1 : vector<8x256xf32>, i32 -> vector<8x256xf32>
    %82 = arith.subf %80, %81 : vector<8x256xf32>
    %83 = vector.broadcast %30 : vector<1x256xf32> to vector<8x256xf32>
    %84 = arith.mulf %82, %83 : vector<8x256xf32>
    %85 = arith.addf %79, %84 : vector<8x256xf32>
    %86 = arith.select %37, %60, %48 : vector<8x256xi1>, vector<8x256xf32>
    %87 = arith.mulf %32, %86 : vector<8x256xf32>
    %88 = arith.select %39, %64, %52 : vector<8x256xi1>, vector<8x256xf32>
    %89 = arith.mulf %33, %88 : vector<8x256xf32>
    %90 = arith.addf %87, %89 : vector<8x256xf32>
    %91 = arith.select %41, %68, %56 : vector<8x256xi1>, vector<8x256xf32>
    %92 = arith.mulf %34, %91 : vector<8x256xf32>
    %93 = arith.addf %90, %92 : vector<8x256xf32>
    %94 = arith.subf %85, %93 : vector<8x256xf32>
    %c7_i32_34 = arith.constant 7 : i32
    %95 = tpu.dynamic_rotate %43 by %c7_i32_34 dim 0 : vector<8x256xf32>, i32 -> vector<8x256xf32>
    %96 = arith.subf %95, %43 : vector<8x256xf32>
    %97 = vector.broadcast %21 : vector<8x1xf32> to vector<8x256xf32>
    %98 = arith.mulf %96, %97 : vector<8x256xf32>
    %c240_i32_35 = arith.constant 240 : i32
    %99 = tpu.dynamic_rotate %43 by %c240_i32_35 dim 1 : vector<8x256xf32>, i32 -> vector<8x256xf32>
    %100 = arith.subf %99, %43 : vector<8x256xf32>
    %101 = vector.broadcast %27 : vector<1x256xf32> to vector<8x256xf32>
    %102 = arith.mulf %100, %101 : vector<8x256xf32>
    %c255_i32_36 = arith.constant 255 : i32
    %103 = tpu.dynamic_rotate %43 by %c255_i32_36 dim 1 : vector<8x256xf32>, i32 -> vector<8x256xf32>
    %104 = arith.subf %103, %43 : vector<8x256xf32>
    %105 = vector.broadcast %29 : vector<1x256xf32> to vector<8x256xf32>
    %106 = arith.mulf %104, %105 : vector<8x256xf32>
    %c1_i32_37 = arith.constant 1 : i32
    %107 = tpu.dynamic_rotate %43 by %c1_i32_37 dim 0 : vector<8x256xf32>, i32 -> vector<8x256xf32>
    %108 = arith.subf %43, %107 : vector<8x256xf32>
    %109 = vector.broadcast %26 : vector<8x1xf32> to vector<8x256xf32>
    %110 = arith.mulf %108, %109 : vector<8x256xf32>
    %c16_i32_38 = arith.constant 16 : i32
    %111 = tpu.dynamic_rotate %43 by %c16_i32_38 dim 1 : vector<8x256xf32>, i32 -> vector<8x256xf32>
    %112 = arith.subf %43, %111 : vector<8x256xf32>
    %113 = vector.broadcast %28 : vector<1x256xf32> to vector<8x256xf32>
    %114 = arith.mulf %112, %113 : vector<8x256xf32>
    %c1_i32_39 = arith.constant 1 : i32
    %115 = tpu.dynamic_rotate %43 by %c1_i32_39 dim 1 : vector<8x256xf32>, i32 -> vector<8x256xf32>
    %116 = arith.subf %43, %115 : vector<8x256xf32>
    %117 = vector.broadcast %30 : vector<1x256xf32> to vector<8x256xf32>
    %118 = arith.mulf %116, %117 : vector<8x256xf32>
    %119 = arith.mulf %31, %98 : vector<8x256xf32>
    %c1_i32_40 = arith.constant 1 : i32
    %120 = tpu.dynamic_rotate %119 by %c1_i32_40 dim 0 : vector<8x256xf32>, i32 -> vector<8x256xf32>
    %121 = arith.subf %119, %120 : vector<8x256xf32>
    %122 = vector.broadcast %26 : vector<8x1xf32> to vector<8x256xf32>
    %123 = arith.mulf %121, %122 : vector<8x256xf32>
    %124 = arith.mulf %31, %102 : vector<8x256xf32>
    %c16_i32_41 = arith.constant 16 : i32
    %125 = tpu.dynamic_rotate %124 by %c16_i32_41 dim 1 : vector<8x256xf32>, i32 -> vector<8x256xf32>
    %126 = arith.subf %124, %125 : vector<8x256xf32>
    %127 = vector.broadcast %28 : vector<1x256xf32> to vector<8x256xf32>
    %128 = arith.mulf %126, %127 : vector<8x256xf32>
    %129 = arith.addf %123, %128 : vector<8x256xf32>
    %130 = arith.mulf %31, %106 : vector<8x256xf32>
    %c1_i32_42 = arith.constant 1 : i32
    %131 = tpu.dynamic_rotate %130 by %c1_i32_42 dim 1 : vector<8x256xf32>, i32 -> vector<8x256xf32>
    %132 = arith.subf %130, %131 : vector<8x256xf32>
    %133 = vector.broadcast %30 : vector<1x256xf32> to vector<8x256xf32>
    %134 = arith.mulf %132, %133 : vector<8x256xf32>
    %135 = arith.addf %129, %134 : vector<8x256xf32>
    %136 = arith.select %37, %110, %98 : vector<8x256xi1>, vector<8x256xf32>
    %137 = arith.mulf %32, %136 : vector<8x256xf32>
    %138 = arith.select %39, %114, %102 : vector<8x256xi1>, vector<8x256xf32>
    %139 = arith.mulf %33, %138 : vector<8x256xf32>
    %140 = arith.addf %137, %139 : vector<8x256xf32>
    %141 = arith.select %41, %118, %106 : vector<8x256xi1>, vector<8x256xf32>
    %142 = arith.mulf %34, %141 : vector<8x256xf32>
    %143 = arith.addf %140, %142 : vector<8x256xf32>
    %144 = arith.subf %135, %143 : vector<8x256xf32>
    %145 = arith.addf %94, %144 : vector<8x256xf32>
    %146 = arith.mulf %35, %145 : vector<8x256xf32>
    %147 = arith.subf %44, %146 : vector<8x256xf32>
    %148 = arith.mulf %147, %147 : vector<8x256xf32>
    %149 = vector.shape_cast %148 : vector<8x256xf32> to vector<1x8x256xf32>
    %cst_43 = arith.constant dense<0.000000e+00> : vector<1xf32>
    %150 = vector.multi_reduction <add>, %149, %cst_43 [1, 2] : vector<1x8x256xf32> to vector<1xf32>
    %151 = vector.shape_cast %150 : vector<1xf32> to vector<1x1x1xf32>
    %152 = vector.extract %151[0, 0, 0] : f32 from vector<1x1x1xf32>
    %153 = vector.broadcast %152 : f32 to vector<1x1xf32>
    %c0_44 = arith.constant 0 : index
    %c0_45 = arith.constant 0 : index
    %c0_46 = arith.constant 0 : index
    %154 = vector.load %arg9[%c0_44, %c0_45, %c0_46] : memref<1x1x1xf32, #tpu.memory_space<vmem>>, vector<1x1x1xf32>
    %155 = vector.shape_cast %154 : vector<1x1x1xf32> to vector<1x1xf32>
    %156 = vector.shape_cast %153 : vector<1x1xf32> to vector<1x1x1xf32>
    tpu.vector_store %arg9[%c0_44, %c0_45, %c0_46], %156 {strides = array<i32>} : memref<1x1x1xf32, #tpu.memory_space<vmem>>, vector<1x1x1xf32>,
    return
  }
  func.func @transform_0(%arg0: i32) -> (i32, i32) {
    %c0_i32 = arith.constant 0 : i32
    %c0_i32_0 = arith.constant 0 : i32
    return %arg0, %c0_i32 : i32, i32
  }
  func.func @transform_1(%arg0: i32) -> (i32, i32) {
    %c0_i32 = arith.constant 0 : i32
    %c0_i32_0 = arith.constant 0 : i32
    return %arg0, %c0_i32 : i32, i32
  }
  func.func @transform_2(%arg0: i32) -> (i32, i32) {
    %c0_i32 = arith.constant 0 : i32
    %c0_i32_0 = arith.constant 0 : i32
    return %arg0, %c0_i32 : i32, i32
  }
  func.func @transform_3(%arg0: i32) -> (i32, i32) {
    %c0_i32 = arith.constant 0 : i32
    %c0_i32_0 = arith.constant 0 : i32
    return %arg0, %c0_i32 : i32, i32
  }
  func.func @transform_4(%arg0: i32) -> (i32, i32) {
    %c0_i32 = arith.constant 0 : i32
    %c0_i32_0 = arith.constant 0 : i32
    return %arg0, %c0_i32 : i32, i32
  }
  func.func @transform_5(%arg0: i32) -> (i32, i32) {
    %c0_i32 = arith.constant 0 : i32
    %c0_i32_0 = arith.constant 0 : i32
    return %arg0, %c0_i32 : i32, i32
  }
  func.func @transform_6(%arg0: i32) -> (i32, i32) {
    %c0_i32 = arith.constant 0 : i32
    %c0_i32_0 = arith.constant 0 : i32
    return %arg0, %c0_i32 : i32, i32
  }
  func.func @transform_7(%arg0: i32) -> (i32, i32) {
    %c0_i32 = arith.constant 0 : i32
    %c0_i32_0 = arith.constant 0 : i32
    %c0_i32_1 = arith.constant 0 : i32
    return %c0_i32, %c0_i32_0 : i32, i32
  }
  func.func @transform_8(%arg0: i32) -> (i32, i32, i32) {
    %c0_i32 = arith.constant 0 : i32
    %c0_i32_0 = arith.constant 0 : i32
    %c0_i32_1 = arith.constant 0 : i32
    return %arg0, %c0_i32, %c0_i32_0 : i32, i32, i32
  }
}

</mosaic_0001>

<bundles_post_ra>
// kernel: squeeze.2
= control target key start
LH: loop header
LB: loop body
LE: loop exit
PB: predicated region body
PF: predicated region fallthrough
CT: control target
= control target key end

     0   :  { %vm65_vm0 = vcmask 1043458   ;;  %s105_s6 = smov 3  ;;  %vm70_vm1 = vcmask 1045508   ;;  %vm75_vm2 = vcmask 1047558   ;;  %s108_s9 = smov 12  ;;  %vm4_vm3 = vcmask 1047556   ;;  %s1498_s0 = inlined_call_operand.vmem [shape: f32[2,8,16,16], index: 0, kind: input, shape index: {}]   ;;  %s1499_s1 = inlined_call_operand.vmem [shape: f32[16,256], index: 1, kind: output, shape index: {}]  }
   0x1   :  { %v726_v0 = vld [vmem:[%s1498_s0 + $0x87] ss:$16 sm:%s105_s6]   ;;  %s113_s10 = smov 48  ;;  %s118_s15 = smov 192  ;;  %vm6_vm4 = vcmask 130048   ;;  %vm79_vm5 = vcmask 1048448  }
   0x2   :  { %v727_v1 = vld [vmem:[%s1498_s0 + $0x87] ss:$16 sm:%s108_s9]   ;;  %s60_s16 = smov 3  ;;  %s63_s21 = smov 12  ;;  %vm170_vm6 = vcmask 917248   ;;  %vm261_vm7 = vcmask 786048  }
   0x3   :  { %v728_v2 = vld [vmem:[%s1498_s0 + $0x87] ss:$16 sm:%s113_s10]   ;;  %v111_v3 = vsel %vm65_vm0, %v727_v1, %v726_v0  ;;  %s68_s22 = smov 48  ;;  %s73_s27 = smov 192  ;;  %vm352_vm8 = vcmask 654848   ;;  %vm443_vm9 = vcmask 523648  }
   0x4   :  { %v729_v4 = vld [vmem:[%s1498_s0 + $0x87] ss:$16 sm:%s118_s15]   ;;  %v116_v6 = vsel %vm70_vm1, %v728_v2, %v111_v3  ;;  %s128_s28 = smov 3  ;;  %s131_s4 = smov 12  ;;  %vm534_vm10 = vcmask 392448   ;;  %vm625_vm11 = vcmask 261248  }
   0x5   :  { %v717_v5 = vld [vmem:[%s1498_s0 + $0x7] ss:$16 sm:%s60_s16]   ;;  %v121_v9 = vsel %vm75_vm2, %v729_v4, %v116_v6  ;;  %v731_v12 = vld [vmem:[%s1498_s0 + $0x8f] ss:$16 sm:%s128_s28]   ;;  %s136_s5 = smov 48  ;;  %s857_s6 = smov 112  }
   0x6   :  { %v718_v7 = vld [vmem:[%s1498_s0 + $0x7] ss:$16 sm:%s63_s21]   ;;  %122 = vrot.lane.b32.xlu1 %v121_v9, %s857_s6  ;;  %s141_s9 = smov 192  ;;  %s82_s10 = smov 3 }
   0x7   :  { %v719_v8 = vld [vmem:[%s1498_s0 + $0x7] ss:$16 sm:%s68_s22]   ;;  %v66_v10 = vsel %vm65_vm0, %v718_v7, %v717_v5  ;;  %v732_v14 = vld [vmem:[%s1498_s0 + $0x8f] ss:$16 sm:%s131_s4]   ;;  %s85_s15 = smov 12  ;;  %s90_s16 = smov 48 }
   0x8   :  { %v720_v11 = vld [vmem:[%s1498_s0 + $0x7] ss:$16 sm:%s73_s27]   ;;  %v71_v13 = vsel %vm70_vm1, %v719_v8, %v66_v10  ;;  %v134_v16 = vsel %vm65_vm0, %v732_v14, %v731_v12  ;;  %v733_v17 = vld [vmem:[%s1498_s0 + $0x8f] ss:$16 sm:%s136_s5]   ;;  %s95_s19 = smov 192  ;;  %s173_s24 = smov 3 }
   0x9   :  { %v76_v15 = vsel %vm75_vm2, %v720_v11, %v71_v13  ;;  %v734_v18 = vld [vmem:[%s1498_s0 + $0x8f] ss:$16 sm:%s141_s9]   ;;  %v139_v19 = vsel %vm70_vm1, %v733_v17, %v134_v16  ;;  %s176_s25 = smov 12  ;;  %s181_s28 = smov 48  ;;  %v740_v27 = vld [vmem:[%s1498_s0 + $0xe] ss:$16 sm:%s173_s24]  }
   0xa   :  { %77 = vrot.lane.b32.xlu0 %v76_v15, %s857_s6  ;;  %v721_v20 = vld [vmem:[%s1498_s0 + $0xf] ss:$16 sm:%s82_s10]   ;;  %v144_v21 = vsel %vm75_vm2, %v734_v18, %v139_v19  ;;  %s186_s29 = smov 192  ;;  %s151_s5 = smov 3 }
   0xb   :  { %v722_v22 = vld [vmem:[%s1498_s0 + $0xf] ss:$16 sm:%s85_s15]   ;;  %145 = vrot.lane.b32.xlu1 %v144_v21, %s857_s6  ;;  %s154_s7 = smov 12  ;;  %s159_s12 = smov 48 }
   0xc   :  { %v723_v23 = vld [vmem:[%s1498_s0 + $0xf] ss:$16 sm:%s90_s16]   ;;  %v88_v24 = vsel %vm65_vm0, %v722_v22, %v721_v20  ;;  %v741_v28 = vld [vmem:[%s1498_s0 + $0xe] ss:$16 sm:%s176_s25]   ;;  %s164_s13 = smov 192  ;;  %s219_s15 = smov 3 }
   0xd   :  { %v724_v25 = vld [vmem:[%s1498_s0 + $0xf] ss:$16 sm:%s95_s19]   ;;  %v93_v26 = vsel %vm70_vm1, %v723_v23, %v88_v24  ;;  %v179_v30 = vsel %vm65_vm0, %v741_v28, %v740_v27  ;;  %v742_v31 = vld [vmem:[%s1498_s0 + $0xe] ss:$16 sm:%s181_s28]   ;;  %s222_s16 = smov 12  ;;  %s227_s21 = smov 48 }
   0xe   :  { %v98_v29 = vsel %vm75_vm2, %v724_v25, %v93_v26  ;;  %v743_v32 = vld [vmem:[%s1498_s0 + $0xe] ss:$16 sm:%s186_s29]   ;;  %v184_v33 = vsel %vm70_vm1, %v742_v31, %v179_v30  ;;  %v736_v34 = vld [vmem:[%s1498_s0 + $0x6] ss:$16 sm:%s151_s5]   ;;  %s232_s22 = smov 192  ;;  %s858_s23 = smov 96  }
   0xf   :  { %99 = vrot.lane.b32.xlu0 %v98_v29, %s857_s6  ;;  %v189_v35 = vsel %vm75_vm2, %v743_v32, %v184_v33  ;;  %v737_v36 = vld [vmem:[%s1498_s0 + $0x6] ss:$16 sm:%s154_s7]   ;;  %s196_s26 = smov 3  ;;  %s199_s2 = smov 12 }
  0x10   :  { %v738_v37 = vld [vmem:[%s1498_s0 + $0x6] ss:$16 sm:%s159_s12]   ;;  %190 = vrot.lane.b32.xlu1 %v189_v35, %s858_s23  ;;  %v157_v38 = vsel %vm65_vm0, %v737_v36, %v736_v34  ;;  %s204_s3 = smov 48  ;;  %s209_s9 = smov 192 }
  0x11   :  { %v739_v39 = vld [vmem:[%s1498_s0 + $0x6] ss:$16 sm:%s164_s13]   ;;  %v162_v40 = vsel %vm70_vm1, %v738_v37, %v157_v38  ;;  %v750_v41 = vld [vmem:[%s1498_s0 + $0x8e] ss:$16 sm:%s219_s15]   ;;  %s264_s12 = smov 3  ;;  %s267_s13 = smov 12 }
  0x12   :  { %v751_v42 = vld [vmem:[%s1498_s0 + $0x8e] ss:$16 sm:%s222_s16]   ;;  %v167_v43 = vsel %vm75_vm2, %v739_v39, %v162_v40  ;;  %v745_v48 = vld [vmem:[%s1498_s0 + $0x86] ss:$16 sm:%s196_s26]   ;;  %s272_s17 = smov 48  ;;  %s277_s18 = smov 192 }
  0x13   :  { %v225_v44 = vsel %vm65_vm0, %v751_v42, %v750_v41  ;;  %v752_v45 = vld [vmem:[%s1498_s0 + $0x8e] ss:$16 sm:%s227_s21]   ;;  %168 = vrot.lane.b32.xlu0 %v167_v43, %s858_s23  ;;  %s242_s21 = smov 3  ;;  %s245_s27 = smov 12 }
  0x14   :  { %v753_v46 = vld [vmem:[%s1498_s0 + $0x8e] ss:$16 sm:%s232_s22]   ;;  %v230_v47 = vsel %vm70_vm1, %v752_v45, %v225_v44  ;;  %v746_v50 = vld [vmem:[%s1498_s0 + $0x86] ss:$16 sm:%s199_s2]   ;;  %s250_s28 = smov 48  ;;  %s255_s4 = smov 192 }
  0x15   :  { %v235_v49 = vsel %vm75_vm2, %v753_v46, %v230_v47  ;;  %v747_v51 = vld [vmem:[%s1498_s0 + $0x86] ss:$16 sm:%s204_s3]   ;;  %v202_v52 = vsel %vm65_vm0, %v746_v50, %v745_v48  ;;  %v759_v55 = vld [vmem:[%s1498_s0 + $0xd] ss:$16 sm:%s264_s12]   ;;  %s310_s7 = smov 3  ;;  %s313_s8 = smov 12 }
  0x16   :  { %236 = vrot.lane.b32.xlu1 %v235_v49, %s858_s23  ;;  %v748_v53 = vld [vmem:[%s1498_s0 + $0x86] ss:$16 sm:%s209_s9]   ;;  %v207_v54 = vsel %vm70_vm1, %v747_v51, %v202_v52  ;;  %s323_s6 = smov 192  ;;  %s859_s14 = smov 80  }
  0x17   :  { %v760_v56 = vld [vmem:[%s1498_s0 + $0xd] ss:$16 sm:%s267_s13]   ;;  %v212_v57 = vsel %vm75_vm2, %v748_v53, %v207_v54  ;;  %v755_v62 = vld [vmem:[%s1498_s0 + $0x5] ss:$16 sm:%s242_s21]   ;;  %s318_s13 = smov 48  ;;  %s290_s22 = smov 12 }
  0x18   :  { %v270_v58 = vsel %vm65_vm0, %v760_v56, %v759_v55  ;;  %v761_v59 = vld [vmem:[%s1498_s0 + $0xd] ss:$16 sm:%s272_s17]   ;;  %213 = vrot.lane.b32.xlu0 %v212_v57, %s858_s23  ;;  %s287_s17 = smov 3  ;;  %s295_s24 = smov 48 }
  0x19   :  { %v762_v60 = vld [vmem:[%s1498_s0 + $0xd] ss:$16 sm:%s277_s18]   ;;  %v275_v61 = vsel %vm70_vm1, %v761_v59, %v270_v58  ;;  %v756_v0 = vld [vmem:[%s1498_s0 + $0x5] ss:$16 sm:%s245_s27]   ;;  %s300_s29 = smov 192  ;;  %s355_s3 = smov 3 }
  0x1a   :  { %v280_v63 = vsel %vm75_vm2, %v762_v60, %v275_v61  ;;  %v757_v1 = vld [vmem:[%s1498_s0 + $0x5] ss:$16 sm:%s250_s28]   ;;  %v248_v2 = vsel %vm65_vm0, %v756_v0, %v755_v62  ;;  %v769_v5 = vld [vmem:[%s1498_s0 + $0x8d] ss:$16 sm:%s310_s7]   ;;  %s363_s9 = smov 48  ;;  %s368_s10 = smov 192 }
  0x1b   :  { %281 = vrot.lane.b32.xlu1 %v280_v63, %s859_s14  ;;  %v758_v3 = vld [vmem:[%s1498_s0 + $0x5] ss:$16 sm:%s255_s4]   ;;  %v253_v4 = vsel %vm70_vm1, %v757_v1, %v248_v2  ;;  %s358_s4 = smov 12  ;;  %s336_s18 = smov 12 }
  0x1c   :  { %v770_v6 = vld [vmem:[%s1498_s0 + $0x8d] ss:$16 sm:%s313_s8]   ;;  %v258_v7 = vsel %vm75_vm2, %v758_v3, %v253_v4  ;;  %v764_v12 = vld [vmem:[%s1498_s0 + $0x85] ss:$16 sm:%s287_s17]   ;;  %s341_s19 = smov 48  ;;  %s346_s25 = smov 192 }
  0x1d   :  { %v316_v8 = vsel %vm65_vm0, %v770_v6, %v769_v5  ;;  %v771_v9 = vld [vmem:[%s1498_s0 + $0x8d] ss:$16 sm:%s318_s13]   ;;  %259 = vrot.lane.b32.xlu0 %v258_v7, %s859_s14  ;;  %s333_s13 = smov 3  ;;  %s401_s27 = smov 3 }
  0x1e   :  { %v772_v10 = vld [vmem:[%s1498_s0 + $0x8d] ss:$16 sm:%s323_s6]   ;;  %v321_v11 = vsel %vm70_vm1, %v771_v9, %v316_v8  ;;  %v765_v14 = vld [vmem:[%s1498_s0 + $0x85] ss:$16 sm:%s290_s22]   ;;  %s404_s28 = smov 12  ;;  %s414_s23 = smov 192 }
  0x1f   :  { %v326_v13 = vsel %vm75_vm2, %v772_v10, %v321_v11  ;;  %v766_v15 = vld [vmem:[%s1498_s0 + $0x85] ss:$16 sm:%s295_s24]   ;;  %v293_v16 = vsel %vm65_vm0, %v765_v14, %v764_v12  ;;  %v778_v19 = vld [vmem:[%s1498_s0 + $0xc] ss:$16 sm:%s355_s3]   ;;  %s860_s5 = smov 64   ;;  %s381_s6 = smov 12 }
  0x20   :  { %327 = vrot.lane.b32.xlu1 %v326_v13, %s859_s14  ;;  %v767_v17 = vld [vmem:[%s1498_s0 + $0x85] ss:$16 sm:%s300_s29]   ;;  %v298_v18 = vsel %vm70_vm1, %v766_v15, %v293_v16  ;;  %s386_s15 = smov 48  ;;  %s391_s20 = smov 192 }
  0x21   :  { %v779_v20 = vld [vmem:[%s1498_s0 + $0xc] ss:$16 sm:%s358_s4]   ;;  %v303_v21 = vsel %vm75_vm2, %v767_v17, %v298_v18  ;;  %v774_v26 = vld [vmem:[%s1498_s0 + $0x4] ss:$16 sm:%s333_s13]   ;;  %s409_s4 = smov 48  ;;  %s446_s24 = smov 3 }
  0x22   :  { %v361_v22 = vsel %vm65_vm0, %v779_v20, %v778_v19  ;;  %v780_v23 = vld [vmem:[%s1498_s0 + $0xc] ss:$16 sm:%s363_s9]   ;;  %304 = vrot.lane.b32.xlu0 %v303_v21, %s859_s14  ;;  %s378_s9 = smov 3  ;;  %s454_s29 = smov 48 }
  0x23   :  { %v781_v24 = vld [vmem:[%s1498_s0 + $0xc] ss:$16 sm:%s368_s10]   ;;  %v366_v25 = vsel %vm70_vm1, %v780_v23, %v361_v22  ;;  %v775_v28 = vld [vmem:[%s1498_s0 + $0x4] ss:$16 sm:%s336_s18]   ;;  %s459_s30 = smov 192  ;;  %s427_s10 = smov 12 }
  0x24   :  { %v371_v27 = vsel %vm75_vm2, %v781_v24, %v366_v25  ;;  %v776_v29 = vld [vmem:[%s1498_s0 + $0x4] ss:$16 sm:%s341_s19]   ;;  %v339_v30 = vsel %vm65_vm0, %v775_v28, %v774_v26  ;;  %v788_v33 = vld [vmem:[%s1498_s0 + $0x8c] ss:$16 sm:%s401_s27]   ;;  %s432_s11 = smov 48  ;;  %s437_s16 = smov 192 }
  0x25   :  { %372 = vrot.lane.b32.xlu1 %v371_v27, %s860_s5  ;;  %v777_v31 = vld [vmem:[%s1498_s0 + $0x4] ss:$16 sm:%s346_s25]   ;;  %v344_v32 = vsel %vm70_vm1, %v776_v29, %v339_v30  ;;  %s449_s25 = smov 12  ;;  %s492_s18 = smov 3 }
  0x26   :  { %v789_v34 = vld [vmem:[%s1498_s0 + $0x8c] ss:$16 sm:%s404_s28]   ;;  %v349_v35 = vsel %vm75_vm2, %v777_v31, %v344_v32  ;;  %v783_v40 = vld [vmem:[%s1498_s0 + $0x84] ss:$16 sm:%s378_s9]   ;;  %s495_s19 = smov 12  ;;  %s505_s14 = smov 192 }
  0x27   :  { %v407_v36 = vsel %vm65_vm0, %v789_v34, %v788_v33  ;;  %v790_v37 = vld [vmem:[%s1498_s0 + $0x8c] ss:$16 sm:%s409_s4]   ;;  %350 = vrot.lane.b32.xlu0 %v349_v35, %s860_s5  ;;  %s424_s4 = smov 3  ;;  %s861_s26 = smov 48  }
  0x28   :  { %v791_v38 = vld [vmem:[%s1498_s0 + $0x8c] ss:$16 sm:%s414_s23]   ;;  %v412_v39 = vsel %vm70_vm1, %v790_v37, %v407_v36  ;;  %v784_v42 = vld [vmem:[%s1498_s0 + $0x84] ss:$16 sm:%s381_s6]   ;;  %s472_s23 = smov 12  ;;  %s477_s7 = smov 48 }
  0x29   :  { %v417_v41 = vsel %vm75_vm2, %v791_v38, %v412_v39  ;;  %v785_v43 = vld [vmem:[%s1498_s0 + $0x84] ss:$16 sm:%s386_s15]   ;;  %v384_v44 = vsel %vm65_vm0, %v784_v42, %v783_v40  ;;  %v797_v47 = vld [vmem:[%s1498_s0 + $0xb] ss:$16 sm:%s446_s24]   ;;  %s482_s12 = smov 192  ;;  %s537_s15 = smov 3 }
  0x2a   :  { %418 = vrot.lane.b32.xlu1 %v417_v41, %s860_s5  ;;  %v786_v45 = vld [vmem:[%s1498_s0 + $0x84] ss:$16 sm:%s391_s20]   ;;  %v389_v46 = vsel %vm70_vm1, %v785_v43, %v384_v44  ;;  %s545_s20 = smov 48  ;;  %s550_s21 = smov 192 }
  0x2b   :  { %v798_v48 = vld [vmem:[%s1498_s0 + $0xb] ss:$16 sm:%s449_s25]   ;;  %v394_v49 = vsel %vm75_vm2, %v786_v45, %v389_v46  ;;  %v793_v54 = vld [vmem:[%s1498_s0 + $0x3] ss:$16 sm:%s424_s4]   ;;  %s500_s25 = smov 48  ;;  %s523_s2 = smov 48 }
  0x2c   :  { %v452_v50 = vsel %vm65_vm0, %v798_v48, %v797_v47  ;;  %v799_v51 = vld [vmem:[%s1498_s0 + $0xb] ss:$16 sm:%s454_s29]   ;;  %395 = vrot.lane.b32.xlu0 %v394_v49, %s860_s5  ;;  %s469_s29 = smov 3  ;;  %s528_s8 = smov 192 }
  0x2d   :  { %v800_v52 = vld [vmem:[%s1498_s0 + $0xb] ss:$16 sm:%s459_s30]   ;;  %v457_v53 = vsel %vm70_vm1, %v799_v51, %v452_v50  ;;  %v794_v56 = vld [vmem:[%s1498_s0 + $0x3] ss:$16 sm:%s427_s10]   ;;  %s518_s30 = smov 12  ;;  %s583_s10 = smov 3 }
  0x2e   :  { %v462_v55 = vsel %vm75_vm2, %v800_v52, %v457_v53  ;;  %v795_v57 = vld [vmem:[%s1498_s0 + $0x3] ss:$16 sm:%s432_s11]   ;;  %v430_v58 = vsel %vm65_vm0, %v794_v56, %v793_v54  ;;  %v807_v61 = vld [vmem:[%s1498_s0 + $0x8b] ss:$16 sm:%s492_s18]   ;;  %s586_s11 = smov 12  ;;  %s596_s5 = smov 192 }
  0x2f   :  { %463 = vrot.lane.b32.xlu1 %v462_v55, %s861_s26  ;;  %v796_v59 = vld [vmem:[%s1498_s0 + $0x3] ss:$16 sm:%s437_s16]   ;;  %v435_v60 = vsel %vm70_vm1, %v795_v57, %v430_v58  ;;  %s540_s16 = smov 12  ;;  %s862_s17 = smov 32  }
  0x30   :  { %v808_v62 = vld [vmem:[%s1498_s0 + $0x8b] ss:$16 sm:%s495_s19]   ;;  %v440_v63 = vsel %vm75_vm2, %v796_v59, %v435_v60  ;;  %v802_v4 = vld [vmem:[%s1498_s0 + $0x83] ss:$16 sm:%s469_s29]   ;;  %s568_s27 = smov 48  ;;  %s573_s3 = smov 192 }
  0x31   :  { %v498_v0 = vsel %vm65_vm0, %v808_v62, %v807_v61  ;;  %v809_v1 = vld [vmem:[%s1498_s0 + $0x8b] ss:$16 sm:%s500_s25]   ;;  %441 = vrot.lane.b32.xlu0 %v440_v63, %s861_s26  ;;  %s515_s25 = smov 3  ;;  %s641_s13 = smov 192 }
  0x32   :  { %v810_v2 = vld [vmem:[%s1498_s0 + $0x8b] ss:$16 sm:%s505_s14]   ;;  %v503_v3 = vsel %vm70_vm1, %v809_v1, %v498_v0  ;;  %v803_v6 = vld [vmem:[%s1498_s0 + $0x83] ss:$16 sm:%s472_s23]   ;;  %s563_s14 = smov 12  ;;  %s609_s24 = smov 12 }
  0x33   :  { %v508_v5 = vsel %vm75_vm2, %v810_v2, %v503_v3  ;;  %v804_v7 = vld [vmem:[%s1498_s0 + $0x83] ss:$16 sm:%s477_s7]   ;;  %v475_v8 = vsel %vm65_vm0, %v803_v6, %v802_v4  ;;  %v816_v11 = vld [vmem:[%s1498_s0 + $0xa] ss:$16 sm:%s537_s15]   ;;  %s628_s7 = smov 3  ;;  %s677_s4 = smov 12 }
  0x34   :  { %509 = vrot.lane.b32.xlu1 %v508_v5, %s861_s26  ;;  %v805_v9 = vld [vmem:[%s1498_s0 + $0x83] ss:$16 sm:%s482_s12]   ;;  %v480_v10 = vsel %vm70_vm1, %v804_v7, %v475_v8  ;;  %s636_s12 = smov 48  ;;  %v2_v38 = vld [vmem:[%s1498_s0] ss:$8 sm:$0xf]  }
  0x35   :  { %v817_v12 = vld [vmem:[%s1498_s0 + $0xa] ss:$16 sm:%s540_s16]   ;;  %v485_v13 = vsel %vm75_vm2, %v805_v9, %v480_v10  ;;  %v812_v18 = vld [vmem:[%s1498_s0 + $0x2] ss:$16 sm:%s515_s25]   ;;  %s591_s16 = smov 48  ;;  %s614_s25 = smov 48 }
  0x36   :  { %v543_v14 = vsel %vm65_vm0, %v817_v12, %v816_v11  ;;  %v818_v15 = vld [vmem:[%s1498_s0 + $0xa] ss:$16 sm:%s545_s20]   ;;  %486 = vrot.lane.b32.xlu0 %v485_v13, %s861_s26  ;;  %s560_s20 = smov 3  ;;  %v3_v48 = vld [vmem:[%s1498_s0] ss:$8 sm:$0xf0]  }
  0x37   :  { %v819_v16 = vld [vmem:[%s1498_s0 + $0xa] ss:$16 sm:%s550_s21]   ;;  %v548_v17 = vsel %vm70_vm1, %v818_v15, %v543_v14  ;;  %v813_v20 = vld [vmem:[%s1498_s0 + $0x2] ss:$16 sm:%s518_s30]   ;;  %s619_s30 = smov 192  ;;  %v5_v52 = vsel %vm4_vm3, %v3_v48, %v2_v38  ;;  %s664_s26 = smov 192 }
  0x38   :  { %v553_v19 = vsel %vm75_vm2, %v819_v16, %v548_v17  ;;  %v814_v21 = vld [vmem:[%s1498_s0 + $0x2] ss:$16 sm:%s523_s2]   ;;  %v521_v22 = vsel %vm65_vm0, %v813_v20, %v812_v18  ;;  %v826_v25 = vld [vmem:[%s1498_s0 + $0x8a] ss:$16 sm:%s583_s10]   ;;  %s674_s2 = smov 3 }
  0x39   :  { %554 = vrot.lane.b32.xlu1 %v553_v19, %s862_s17  ;;  %v815_v23 = vld [vmem:[%s1498_s0 + $0x2] ss:$16 sm:%s528_s8]   ;;  %v526_v24 = vsel %vm70_vm1, %v814_v21, %v521_v22  ;;  %s631_s8 = smov 12  ;;  %7 = vst.msk [vmem:[%s1499_s1] ss:$8 sm:$0x3] %vm6_vm4, %v5_v52  }
  0x3a   :  { %v827_v26 = vld [vmem:[%s1498_s0 + $0x8a] ss:$16 sm:%s586_s11]   ;;  %v531_v27 = vsel %vm75_vm2, %v815_v23, %v526_v24  ;;  %v821_v32 = vld [vmem:[%s1498_s0 + $0x82] ss:$16 sm:%s560_s20]   ;;  %s682_s11 = smov 48 }
  0x3b   :  { %v589_v28 = vsel %vm65_vm0, %v827_v26, %v826_v25  ;;  %v828_v29 = vld [vmem:[%s1498_s0 + $0x8a] ss:$16 sm:%s591_s16]   ;;  %532 = vrot.lane.b32.xlu0 %v531_v27, %s862_s17  ;;  %s606_s16 = smov 3  ;;  %696 = vst.msk [vmem:[%s1499_s1 - $0xf] ss:$8 sm:$0xc] %vm6_vm4, %v5_v52  }
  0x3c   :  { %v829_v30 = vld [vmem:[%s1498_s0 + $0x8a] ss:$16 sm:%s596_s5]   ;;  %v594_v31 = vsel %vm70_vm1, %v828_v29, %v589_v28  ;;  %v822_v34 = vld [vmem:[%s1498_s0 + $0x82] ss:$16 sm:%s563_s14]  }
  0x3d   :  { %v599_v33 = vsel %vm75_vm2, %v829_v30, %v594_v31  ;;  %v823_v35 = vld [vmem:[%s1498_s0 + $0x82] ss:$16 sm:%s568_s27]   ;;  %v566_v36 = vsel %vm65_vm0, %v822_v34, %v821_v32  ;;  %v835_v40 = vld [vmem:[%s1498_s0 + $0x9] ss:$16 sm:%s628_s7]  }
  0x3e   :  { %600 = vrot.lane.b32.xlu1 %v599_v33, %s862_s17  ;;  %v824_v37 = vld [vmem:[%s1498_s0 + $0x82] ss:$16 sm:%s573_s3]   ;;  %v571_v39 = vsel %vm70_vm1, %v823_v35, %v566_v36  ;;  %697 = vst.msk [vmem:[%s1499_s1 - $0x1e] ss:$8 sm:$0x30] %vm6_vm4, %v5_v52   ;;  %s659_s3 = smov 48 }
  0x3f   :  { %v836_v41 = vld [vmem:[%s1498_s0 + $0x9] ss:$16 sm:%s631_s8]   ;;  %v576_v42 = vsel %vm75_vm2, %v824_v37, %v571_v39  ;;  %v831_v47 = vld [vmem:[%s1498_s0 + $0x1] ss:$16 sm:%s606_s16]   ;;  %s651_s16 = smov 3 }
  0x40   :  { %v634_v43 = vsel %vm65_vm0, %v836_v41, %v835_v40  ;;  %v837_v44 = vld [vmem:[%s1498_s0 + $0x9] ss:$16 sm:%s636_s12]   ;;  %577 = vrot.lane.b32.xlu0 %v576_v42, %s862_s17  ;;  %s687_s12 = smov 192  ;;  %698 = vst.msk [vmem:[%s1499_s1 - $0x2d] ss:$8 sm:$0xc0] %vm6_vm4, %v5_v52  }
  0x41   :  { %v838_v45 = vld [vmem:[%s1498_s0 + $0x9] ss:$16 sm:%s641_s13]   ;;  %v639_v46 = vsel %vm70_vm1, %v837_v44, %v634_v43  ;;  %v832_v50 = vld [vmem:[%s1498_s0 + $0x1] ss:$16 sm:%s609_s24]   ;;  %s863_s13 = smov 16   ;;  %s654_s17 = smov 12 }
  0x42   :  { %v644_v49 = vsel %vm75_vm2, %v838_v45, %v639_v46  ;;  %v833_v51 = vld [vmem:[%s1498_s0 + $0x1] ss:$16 sm:%s614_s25]   ;;  %v612_v53 = vsel %vm65_vm0, %v832_v50, %v831_v47  ;;  %v699_v55 = vld [vmem:[%s1498_s0 + $0x40] ss:$8 sm:$0xf]  }
  0x43   :  { %645 = vrot.lane.b32.xlu1 %v644_v49, %s863_s13  ;;  %v834_v54 = vld [vmem:[%s1498_s0 + $0x1] ss:$16 sm:%s619_s30]   ;;  %v617_v56 = vsel %vm70_vm1, %v833_v51, %v612_v53  ;;  %v700_v1 = vld [vmem:[%s1498_s0 + $0x40] ss:$8 sm:$0xf0]  }
  0x44   :  { %v845_v57 = vld [vmem:[%s1498_s0 + $0x89] ss:$16 sm:%s674_s2]   ;;  %v622_v59 = vsel %vm75_vm2, %v834_v54, %v617_v56  ;;  %v840_v0 = vld [vmem:[%s1498_s0 + $0x81] ss:$16 sm:%s651_s16]   ;;  %v19_v5 = vsel %vm4_vm3, %v700_v1, %v699_v55 }
  0x45   :  { %v846_v58 = vld [vmem:[%s1498_s0 + $0x89] ss:$16 sm:%s677_s4]   ;;  %623 = vrot.lane.b32.xlu0 %v622_v59, %s863_s13  ;;  %701 = vst.msk [vmem:[%s1499_s1 + $0x4] ss:$8 sm:$0x3] %vm6_vm4, %v19_v5  }
  0x46   :  { %v680_v60 = vsel %vm65_vm0, %v846_v58, %v845_v57  ;;  %v847_v61 = vld [vmem:[%s1498_s0 + $0x89] ss:$16 sm:%s682_s11]   ;;  %v841_v3 = vld [vmem:[%s1498_s0 + $0x81] ss:$16 sm:%s654_s17]  }
  0x47   :  { %v848_v62 = vld [vmem:[%s1498_s0 + $0x89] ss:$16 sm:%s687_s12]   ;;  %v685_v63 = vsel %vm70_vm1, %v847_v61, %v680_v60  ;;  %v842_v4 = vld [vmem:[%s1498_s0 + $0x81] ss:$16 sm:%s659_s3]   ;;  %v657_v6 = vsel %vm65_vm0, %v841_v3, %v840_v0 }
  0x48   :  { %v690_v2 = vsel %vm75_vm2, %v848_v62, %v685_v63  ;;  %v843_v7 = vld [vmem:[%s1498_s0 + $0x81] ss:$16 sm:%s664_s26]   ;;  %702 = vst.msk [vmem:[%s1499_s1 - $0xb] ss:$8 sm:$0xc] %vm6_vm4, %v19_v5   ;;  %v662_v9 = vsel %vm70_vm1, %v842_v4, %v657_v6 }
  0x49   :  { %691 = vrot.lane.b32.xlu1 %v690_v2, %s863_s13  ;;  %703 = vst.msk [vmem:[%s1499_s1 - $0x1a] ss:$8 sm:$0x30] %vm6_vm4, %v19_v5   ;;  %704 = vst.msk [vmem:[%s1499_s1 - $0x29] ss:$8 sm:$0xc0] %vm6_vm4, %v19_v5   ;;  %v667_v12 = vsel %vm75_vm2, %v843_v7, %v662_v9 }
  0x4a   :  { %v705_v8 = vld [vmem:[%s1498_s0 + $0x80] ss:$8 sm:$0xf]   ;;  %668 = vrot.lane.b32.xlu0 %v667_v12, %s863_s13 }
  0x4b   :  { %v706_v10 = vld [vmem:[%s1498_s0 + $0x80] ss:$8 sm:$0xf0]  }
  0x4c   :  { %v711_v11 = vld [vmem:[%s1498_s0 + $0xc0] ss:$8 sm:$0xf]   ;;  %v34_v13 = vsel %vm4_vm3, %v706_v10, %v705_v8 }
  0x4d   :  { %v712_v14 = vld [vmem:[%s1498_s0 + $0xc0] ss:$8 sm:$0xf0]   ;;  %707 = vst.msk [vmem:[%s1499_s1 + $0x10] ss:$8 sm:$0x3] %vm6_vm4, %v34_v13  }
  0x4e   :  { %708 = vst.msk [vmem:[%s1499_s1 + $0x1] ss:$8 sm:$0xc] %vm6_vm4, %v34_v13   ;;  %709 = vst.msk [vmem:[%s1499_s1 - $0xe] ss:$8 sm:$0x30] %vm6_vm4, %v34_v13   ;;  %v49_v15 = vsel %vm4_vm3, %v712_v14, %v711_v11 }
  0x4f   :  { %710 = vst.msk [vmem:[%s1499_s1 - $0x1d] ss:$8 sm:$0xc0] %vm6_vm4, %v34_v13   ;;  %713 = vst.msk [vmem:[%s1499_s1 + $0x14] ss:$8 sm:$0x3] %vm6_vm4, %v49_v15  }
  0x50   :  { %714 = vst.msk [vmem:[%s1499_s1 + $0x5] ss:$8 sm:$0xc] %vm6_vm4, %v49_v15   ;;  %715 = vst.msk [vmem:[%s1499_s1 - $0xa] ss:$8 sm:$0x30] %vm6_vm4, %v49_v15  }
  0x51   :  { %716 = vst.msk [vmem:[%s1499_s1 - $0x19] ss:$8 sm:$0xc0] %vm6_vm4, %v49_v15  }
  0x78   :  { %v123_v16 = vpop.permute.xlu1 %122  }
  0x79   :  { %730 = vst.msk [vmem:[%s1499_s1 + $0x10] sm:$0xff] %vm79_vm5, %v123_v16  }
  0x7c   :  { %v78_v17 = vpop.permute.xlu0 %77  }
  0x7d   :  { %80 = vst.msk [vmem:[%s1499_s1] sm:$0xff] %vm79_vm5, %v78_v17   ;;  %v146_v18 = vpop.permute.xlu1 %145  }
  0x7e   :  { %735 = vst.msk [vmem:[%s1499_s1 + $0x18] sm:$0xff] %vm79_vm5, %v146_v18  }
  0x81   :  { %v100_v19 = vpop.permute.xlu0 %99  }
  0x82   :  { %725 = vst.msk [vmem:[%s1499_s1 + $0x8] sm:$0xff] %vm79_vm5, %v100_v19   ;;  %v191_v20 = vpop.permute.xlu1 %190  }
  0x83   :  { %744 = vst.msk [vmem:[%s1499_s1 + $0x8] sm:$0xff] %vm170_vm6, %v191_v20  }
  0x85   :  { %v169_v21 = vpop.permute.xlu0 %168  }
  0x86   :  { %171 = vst.msk [vmem:[%s1499_s1] sm:$0xff] %vm170_vm6, %v169_v21  }
  0x88   :  { %v237_v22 = vpop.permute.xlu1 %236  }
  0x89   :  { %754 = vst.msk [vmem:[%s1499_s1 + $0x18] sm:$0xff] %vm170_vm6, %v237_v22  }
  0x8a   :  { %v214_v23 = vpop.permute.xlu0 %213  }
  0x8b   :  { %749 = vst.msk [vmem:[%s1499_s1 + $0x10] sm:$0xff] %vm170_vm6, %v214_v23  }
  0x8d   :  { %v282_v24 = vpop.permute.xlu1 %281  }
  0x8e   :  { %763 = vst.msk [vmem:[%s1499_s1 + $0x8] sm:$0xff] %vm261_vm7, %v282_v24  }
  0x8f   :  { %v260_v25 = vpop.permute.xlu0 %259  }
  0x90   :  { %262 = vst.msk [vmem:[%s1499_s1] sm:$0xff] %vm261_vm7, %v260_v25  }
  0x92   :  { %v328_v26 = vpop.permute.xlu1 %327  }
  0x93   :  { %773 = vst.msk [vmem:[%s1499_s1 + $0x18] sm:$0xff] %vm261_vm7, %v328_v26  }
  0x94   :  { %v305_v27 = vpop.permute.xlu0 %304  }
  0x95   :  { %768 = vst.msk [vmem:[%s1499_s1 + $0x10] sm:$0xff] %vm261_vm7, %v305_v27  }
  0x97   :  { %v373_v28 = vpop.permute.xlu1 %372  }
  0x98   :  { %782 = vst.msk [vmem:[%s1499_s1 + $0x8] sm:$0xff] %vm352_vm8, %v373_v28  }
  0x99   :  { %v351_v29 = vpop.permute.xlu0 %350  }
  0x9a   :  { %353 = vst.msk [vmem:[%s1499_s1] sm:$0xff] %vm352_vm8, %v351_v29  }
  0x9c   :  { %v419_v30 = vpop.permute.xlu1 %418  }
  0x9d   :  { %792 = vst.msk [vmem:[%s1499_s1 + $0x18] sm:$0xff] %vm352_vm8, %v419_v30  }
  0x9e   :  { %v396_v31 = vpop.permute.xlu0 %395  }
  0x9f   :  { %787 = vst.msk [vmem:[%s1499_s1 + $0x10] sm:$0xff] %vm352_vm8, %v396_v31  }
  0xa1   :  { %v464_v32 = vpop.permute.xlu1 %463  }
  0xa2   :  { %801 = vst.msk [vmem:[%s1499_s1 + $0x8] sm:$0xff] %vm443_vm9, %v464_v32  }
  0xa3   :  { %v442_v33 = vpop.permute.xlu0 %441  }
  0xa4   :  { %444 = vst.msk [vmem:[%s1499_s1] sm:$0xff] %vm443_vm9, %v442_v33  }
  0xa6   :  { %v510_v34 = vpop.permute.xlu1 %509  }
  0xa7   :  { %811 = vst.msk [vmem:[%s1499_s1 + $0x18] sm:$0xff] %vm443_vm9, %v510_v34  }
  0xa8   :  { %v487_v35 = vpop.permute.xlu0 %486  }
  0xa9   :  { %806 = vst.msk [vmem:[%s1499_s1 + $0x10] sm:$0xff] %vm443_vm9, %v487_v35  }
  0xab   :  { %v555_v36 = vpop.permute.xlu1 %554  }
  0xac   :  { %820 = vst.msk [vmem:[%s1499_s1 + $0x8] sm:$0xff] %vm534_vm10, %v555_v36  }
  0xad   :  { %v533_v37 = vpop.permute.xlu0 %532  }
  0xae   :  { %535 = vst.msk [vmem:[%s1499_s1] sm:$0xff] %vm534_vm10, %v533_v37  }
  0xb0   :  { %v601_v38 = vpop.permute.xlu1 %600  }
  0xb1   :  { %830 = vst.msk [vmem:[%s1499_s1 + $0x18] sm:$0xff] %vm534_vm10, %v601_v38  }
  0xb2   :  { %v578_v39 = vpop.permute.xlu0 %577  }
  0xb3   :  { %825 = vst.msk [vmem:[%s1499_s1 + $0x10] sm:$0xff] %vm534_vm10, %v578_v39  }
  0xb5   :  { %v646_v40 = vpop.permute.xlu1 %645  }
  0xb6   :  { %839 = vst.msk [vmem:[%s1499_s1 + $0x8] sm:$0xff] %vm625_vm11, %v646_v40  }
  0xb7   :  { %v624_v41 = vpop.permute.xlu0 %623  }
  0xb8   :  { %626 = vst.msk [vmem:[%s1499_s1] sm:$0xff] %vm625_vm11, %v624_v41  }
  0xbb   :  { %v692_v42 = vpop.permute.xlu1 %691  }
  0xbc   :  { %849 = vst.msk [vmem:[%s1499_s1 + $0x18] sm:$0xff] %vm625_vm11, %v692_v42   ;;  %v669_v43 = vpop.permute.xlu0 %668  }
  0xbd   :  { %844 = vst.msk [vmem:[%s1499_s1 + $0x10] sm:$0xff] %vm625_vm11, %v669_v43  }

// kernel: conserv_loss.1
= control target key start
LH: loop header
LB: loop body
LE: loop exit
PB: predicated region body
PF: predicated region fallthrough
CT: control target
= control target key end

     0   :  { %s975_s27 = smov 0   ;;  %s1365_s0 = inlined_call_operand.vmem [shape: f32[16,256], index: 0, kind: input, shape index: {}]   ;;  %s1366_s1 = inlined_call_operand.vmem [shape: f32[16,256], index: 1, kind: input, shape index: {}]   ;;  %s1367_s2 = inlined_call_operand.vmem [shape: f32[16,256], index: 2, kind: input, shape index: {}]   ;;  %s1368_s3 = inlined_call_operand.vmem [shape: f32[16,256], index: 3, kind: input, shape index: {}]   ;;  %s1369_s4 = inlined_call_operand.vmem [shape: f32[16,256], index: 4, kind: input, shape index: {}]   ;;  %s1370_s5 = inlined_call_operand.vmem [shape: f32[16,256], index: 5, kind: input, shape index: {}]   ;;  %s1371_s6 = inlined_call_operand.vmem [shape: f32[16,256], index: 6, kind: input, shape index: {}]   ;;  %s1372_s7 = inlined_call_operand.vmem [shape: f32[4,256], index: 7, kind: input, shape index: {}]   ;;  %s1373_s8 = inlined_call_operand.vmem [shape: f32[2,1,1], index: 8, kind: output, shape index: {}]  }
   0x1 LB: > { %s871_s28 = sadd.s32 4294967295, %s923_s27   ;;  %p875_p0 = scmp.ge.s32.totalorder %s923_s27, 1  ;;  %s923_s27 = sphi %s975_s27, %s18_s27  }
   0x2   : > { %p322_p1 = scmp.lt.s32.totalorder %s923_s27, 3 }
   0x4   : > { %p323_p2 = pnand %p875_p0, %p322_p1 }
   0x5   : > { %p384_p3 = scmp.lt.s32.totalorder (!%p323_p2), %s871_s28, 1  ;;  %s925_s14 = smov (!%p323_p2), 112   ;;  %v422_v4 = vlaneseq (!%p323_p2)  ;;  %v929_v13 = vmov (!%p323_p2), 0.0   ;;  %v440_v27 = vld [vmem:[%s1372_s7] ss:$4 sm:$0x3] (!%p323_p2) }
   0x6   : > { %326 = sbr.rel (%p323_p2) target bundleno = 496 (0x1f0), region = 52  ;;  %s926_s15 = smov (!%p323_p2), 127   ;;  %v891_v36 = vld [vmem:[%s1372_s7 + $0x2] ss:$4 sm:$0x3] (!%p323_p2)  ;;  %vm750_vm12 = vcmask (!%p323_p2), 0  }
   0x7   : > { %s927_s16 = smov (!%p323_p2), 16   ;;  %s928_s17 = smov (!%p323_p2), 1   ;;  %v423_v5 = vshrl.u32 (!%p323_p2), %v422_v4, 7  ;;  %v1044_v19 = vand.u32 (!%p323_p2), 127, %v422_v4 }
   0x9   : > { %v428_v6 = vand.u32 (!%p323_p2), 7, %v423_v5  ;;  %v1058_v25 = vsub.s32 (!%p323_p2), 0, %v423_v5  ;;  %v1060_v26 = vsub.s32 (!%p323_p2), 1, %v423_v5  ;;  %vm481_vm2 = vcmp.lt.s32.totalorder (!%p323_p2), %v1044_v19, 112 }
   0xa   : > { %vm503_vm3 = vcmp.lt.s32.totalorder (!%p323_p2), %v1044_v19, 127  ;;  %vm531_vm4 = vcmp.lt.s32.totalorder (!%p323_p2), %v1044_v19, 16  ;;  %vm553_vm9 = vcmp.lt.s32.totalorder (!%p323_p2), %v1044_v19, 1 }
   0xb   : > { %vm436_vm0 = vcmp.lt.s32.totalorder (!%p323_p2), %v428_v6, 7  ;;  %vm1054_vm1 = vcmp.gt.s32.totalorder (!%p323_p2), %v428_v6, 0  ;;  %v490_v41 = vrot.slane (!%p323_p2), %v440_v27, %v1058_v25  ;;  %v494_v42 = vrot.slane (!%p323_p2), %v440_v27, %v1060_v26 }
   0xc   : > { %v437_v14 = vsel (!%p323_p2), %vm436_vm0, 2.0, %v929_v13  ;;  %v1084_v43 = vsel (!%p323_p2), %vm1054_vm1, 2.0, %v929_v13  ;;  %v512_v50 = vrot.slane (!%p323_p2), %v891_v36, %v1058_v25  ;;  %v516_v51 = vrot.slane (!%p323_p2), %v891_v36, %v1060_v26 }
   0xd   : > { %s1377_s28 = smov (!%p384_p3, %s871_s28), 1 }
   0xe   : > { %s986_s29 = sshll.u32 %s1377_s28, 4  ;;  %s421_s23 = scalar_lea.vmem %s1373_s8, %s1377_s28 }
   0xf   : > { %s393_s10 = scalar_lea.vmem %s1366_s1, %s986_s29  ;;  %s388_s13 = scalar_lea.vmem %s1365_s0, %s986_s29 }
  0x10   : > { %v996_v0 = vld [vmem:[%s393_s10] sm:$0xff]  ;;  %v1002_v2 = vld [vmem:[%s393_s10 + $0x8] sm:$0xff]  ;;  %s398_s20 = scalar_lea.vmem %s1367_s2, %s986_s29  ;;  %s403_s30 = scalar_lea.vmem %s1368_s3, %s986_s29 }
  0x11   : > { %v998_v1 = vld [vmem:[%s388_s13] sm:$0xff]  ;;  %631 = vrot.lane.b32.xlu1 %v996_v0, %s925_s14  ;;  %v1004_v3 = vld [vmem:[%s388_s13 + $0x8] sm:$0xff]  ;;  %v625_v11 = vrot.slane %v996_v0, 1  ;;  %v626_v12 = vrot.slane %v1002_v2, 1  ;;  %v651_v62 = vrot.slane %v996_v0, 7  ;;  %v652_v63 = vrot.slane %v1002_v2, 7  ;;  %s408_s13 = scalar_lea.vmem %s1369_s4, %s986_s29  ;;  %s413_s19 = scalar_lea.vmem %s1370_s5, %s986_s29 }
  0x12   : > { %475 = vrot.lane.b32.xlu0 %v998_v1, %s925_s14  ;;  %v470_v7 = vrot.slane %v1004_v3, 1  ;;  %v469_v8 = vrot.slane %v998_v1, 1  ;;  %v1046_v20 = vld [vmem:[%s398_s20 + $0x8] sm:$0xff]  ;;  %v1048_v21 = vld [vmem:[%s398_s20] sm:$0xff]  ;;  %v522_v34 = vrot.slane %v1004_v3, 7  ;;  %v521_v35 = vrot.slane %v998_v1, 7  ;;  %s418_s21 = scalar_lea.vmem %s1371_s6, %s986_s29 }
  0x13   : > { %v627_v17 = vsub.f32 %v625_v11, %v996_v0  ;;  %v628_v18 = vsub.f32 %v626_v12, %v1002_v2  ;;  %v890_v12 = vld [vmem:[%s1372_s7 + $0x1] ss:$4 sm:$0x3] }
  0x14   : > { %v472_v9 = vsub.f32 %v470_v7, %v1004_v3  ;;  %v471_v10 = vsub.f32 %v469_v8, %v998_v1  ;;  %v524_v52 = vsub.f32 %v1004_v3, %v522_v34  ;;  %v523_v53 = vsub.f32 %v998_v1, %v521_v35 }
  0x15   : > { %633 = vrot.lane.b32.xlu1 %v1002_v2, %s925_s14  ;;  %v1065_v28 = vmul.f32 %v627_v17, %v437_v14  ;;  %v1067_v29 = vmul.f32 %v628_v18, %v437_v14  ;;  %v1130_v17 = vld [vmem:[%s403_s30] sm:$0xff]  ;;  %v1132_v18 = vld [vmem:[%s403_s30 + $0x8] sm:$0xff]  ;;  %v653_v35 = vsub.f32 %v996_v0, %v651_v62 }
  0x16   : > { %477 = vrot.lane.b32.xlu0 %v1004_v3, %s925_s14  ;;  %v1038_v15 = vmul.f32 %v472_v9, %v437_v14  ;;  %v1040_v16 = vmul.f32 %v471_v10, %v437_v14  ;;  %v525_v34 = vmul.f32 %v523_v53, %v1084_v43  ;;  %vm457_vm5 = vcmp.gt.f32.partialorder %v1130_v17, 0.0  ;;  %v1188_v53 = vld [vmem:[%s408_s13] sm:$0xff] }
  0x17   : > { %v677_v39 = vmul.f32 %v1065_v28, %v1048_v21  ;;  %v678_v40 = vmul.f32 %v1067_v29, %v1046_v20  ;;  %vm458_vm6 = vcmp.gt.f32.partialorder %v1132_v18, 0.0  ;;  %vm459_vm7 = vcmp.gt.f32.partialorder %v1188_v53, 0.0 }
  0x18   : > { %v572_v22 = vmul.f32 %v1038_v15, %v1046_v20  ;;  %v571_v23 = vmul.f32 %v1040_v16, %v1048_v21 }
  0x19   : > { %501 = vrot.lane.b32.xlu1 %v1004_v3, %s926_s15  ;;  %v679_v46 = vrot.slane %v677_v39, 7  ;;  %v680_v47 = vrot.slane %v678_v40, 7 }
  0x1a   : > { %499 = vrot.lane.b32.xlu0 %v998_v1, %s926_s15  ;;  %v574_v30 = vrot.slane %v572_v22, 7  ;;  %v573_v31 = vrot.slane %v571_v23, 7 }
  0x1b   : > { %v681_v4 = vsub.f32 %v677_v39, %v679_v46  ;;  %v682_v5 = vsub.f32 %v678_v40, %v680_v47  ;;  %v654_v46 = vsub.f32 %v1002_v2, %v652_v63 }
  0x1c   : > { %v576_v37 = vsub.f32 %v572_v22, %v574_v30  ;;  %v575_v38 = vsub.f32 %v571_v23, %v573_v31 }
  0x1d   : > { %643 = vrot.lane.b32.xlu1 %v1002_v2, %s926_s15  ;;  %v1135_v22 = vmul.f32 %v681_v4, %v1084_v43  ;;  %v1138_v23 = vmul.f32 %v682_v5, %v1084_v43  ;;  %v892_v5 = vld [vmem:[%s1372_s7 + $0x3] ss:$4 sm:$0x3] }
  0x1e   : > { %641 = vrot.lane.b32.xlu0 %v996_v0, %s926_s15  ;;  %v1087_v44 = vmul.f32 %v576_v37, %v1084_v43  ;;  %v1090_v45 = vmul.f32 %v575_v38, %v1084_v43 }
  0x21   : > { %529 = vrot.lane.b32.xlu1 %v1004_v3, %s927_s16 }
  0x22   : > { %527 = vrot.lane.b32.xlu0 %v998_v1, %s927_s16 }
  0x25   : > { %659 = vrot.lane.b32.xlu1 %v1002_v2, %s927_s16 }
  0x26   : > { %657 = vrot.lane.b32.xlu0 %v996_v0, %s927_s16 }
  0x29   : > { %551 = vrot.lane.b32.xlu1 %v1004_v3, %s928_s17 }
  0x2a   : > { %549 = vrot.lane.b32.xlu0 %v998_v1, %s928_s17 }
  0x2d   : > { %669 = vrot.lane.b32.xlu1 %v1002_v2, %s928_s17 }
  0x2e   : > { %667 = vrot.lane.b32.xlu0 %v996_v0, %s928_s17 }
  0x83   : > { %v632_v32 = vpop.permute.xlu1 %631 }
  0x84   : > { %v476_v33 = vpop.permute.xlu0 %475 }
  0x87   : > { %v634_v48 = vpop.permute.xlu1 %633 }
  0x88   : > { %v478_v49 = vpop.permute.xlu0 %477  ;;  %v635_v54 = vsel %vm481_vm2, %v632_v32, %v634_v48  ;;  %v636_v55 = vsel %vm481_vm2, %v634_v48, %v632_v32  ;;  %v526_v32 = vmul.f32 %v524_v52, %v1084_v43 }
  0x89   : > { %v482_v56 = vsel %vm481_vm2, %v476_v33, %v478_v49  ;;  %v483_v57 = vsel %vm481_vm2, %v478_v49, %v476_v33  ;;  %v637_v58 = vsub.f32 %v635_v54, %v996_v0  ;;  %v638_v59 = vsub.f32 %v636_v55, %v1002_v2  ;;  %v1190_v54 = vld [vmem:[%s408_s13 + $0x8] sm:$0xff] }
  0x8a   : > { %v484_v60 = vsub.f32 %v482_v56, %v998_v1  ;;  %v485_v61 = vsub.f32 %v483_v57, %v1004_v3  ;;  %v1152_v33 = vrot.slane %v890_v12, %v1058_v25  ;;  %v608_v55 = vsel %vm458_vm6, %v526_v32, %v1038_v15 }
  0x8b   : > { %v1115_v6 = vmul.f32 %v637_v58, %v490_v41  ;;  %v1117_v7 = vmul.f32 %v638_v59, %v494_v42  ;;  %v502_v10 = vpop.permute.xlu1 %501  ;;  %v607_v56 = vsel %vm457_vm5, %v525_v34, %v1040_v16  ;;  %v655_v58 = vmul.f32 %v653_v35, %v1084_v43 }
  0x8c   : > { %v1119_v8 = vmul.f32 %v490_v41, %v484_v60  ;;  %v1121_v9 = vmul.f32 %v494_v42, %v485_v61  ;;  %v500_v11 = vpop.permute.xlu0 %499  ;;  %v1175_v42 = vrot.slane %v890_v12, %v1060_v26  ;;  %vm460_vm8 = vcmp.gt.f32.partialorder %v1190_v54, 0.0 }
  0x8d   : > { %v504_v13 = vsel %vm503_vm3, %v500_v11, %v502_v10  ;;  %v505_v14 = vsel %vm503_vm3, %v502_v10, %v500_v11  ;;  %v1182_v49 = vmul.f32 %v1117_v7, %v1046_v20  ;;  %v1186_v52 = vmul.f32 %v1115_v6, %v1048_v21 }
  0x8e   : > { %v506_v24 = vsub.f32 %v504_v13, %v998_v1  ;;  %v507_v27 = vsub.f32 %v505_v14, %v1004_v3  ;;  %v1144_v30 = vmul.f32 %v1121_v9, %v1046_v20  ;;  %v1148_v31 = vmul.f32 %v1119_v8, %v1048_v21 }
  0x8f   : > { %v644_v38 = vpop.permute.xlu1 %643  ;;  %v610_v10 = vmul.f32 %v608_v55, %v1132_v18  ;;  %v609_v11 = vmul.f32 %v607_v56, %v1130_v17  ;;  %v1259_v35 = vrot.slane %v892_v5, %v1058_v25  ;;  %v1273_v25 = vrot.slane %v892_v5, %v1060_v26  ;;  %v453_v55 = vld [vmem:[%s413_s19] sm:$0xff]  ;;  %v454_v56 = vld [vmem:[%s413_s19 + $0x8] sm:$0xff] }
  0x90   : > { %v1156_v36 = vmul.f32 %v512_v50, %v506_v24  ;;  %v1158_v37 = vmul.f32 %v516_v51, %v507_v27  ;;  %583 = vrot.lane.b32.xlu1 %v1144_v30, %s927_s16  ;;  %581 = vrot.lane.b32.xlu0 %v1148_v31, %s927_s16  ;;  %v642_v39 = vpop.permute.xlu0 %641  ;;  %vm461_vm10 = vcmp.gt.f32.partialorder %v453_v55, 0.0  ;;  %vm462_vm11 = vcmp.gt.f32.partialorder %v454_v56, 0.0 }
  0x91   : > { %v645_v40 = vsel %vm503_vm3, %v642_v39, %v644_v38  ;;  %v646_v41 = vsel %vm503_vm3, %v644_v38, %v642_v39 }
  0x92   : > { %v647_v47 = vsub.f32 %v645_v40, %v996_v0  ;;  %v648_v48 = vsub.f32 %v646_v41, %v1002_v2  ;;  %v1200_v57 = vmul.f32 %v1158_v37, %v1046_v20  ;;  %v1213_v16 = vmul.f32 %v1156_v36, %v1048_v21 }
  0x93   : > { %v530_v61 = vpop.permute.xlu1 %529 }
  0x94   : > { %v1203_v59 = vmul.f32 %v647_v47, %v512_v50  ;;  %v1205_v60 = vmul.f32 %v648_v48, %v516_v51  ;;  %689 = vrot.lane.b32.xlu1 %v1182_v49, %s927_s16  ;;  %687 = vrot.lane.b32.xlu0 %v1186_v52, %s927_s16  ;;  %v528_v15 = vpop.permute.xlu0 %527  ;;  %v656_v51 = vmul.f32 %v654_v46, %v1084_v43 }
  0x95   : > { %v532_v62 = vsel %vm531_vm4, %v528_v15, %v530_v61  ;;  %v533_v50 = vsel %vm531_vm4, %v530_v61, %v528_v15  ;;  %v713_v43 = vsel %vm457_vm5, %v655_v58, %v1065_v28 }
  0x96   : > { %v534_v63 = vsub.f32 %v998_v1, %v533_v50  ;;  %v535_v4 = vsub.f32 %v1004_v3, %v532_v62  ;;  %v1234_v12 = vmul.f32 %v1205_v60, %v1046_v20  ;;  %v1244_v32 = vmul.f32 %v1203_v59, %v1048_v21 }
  0x97   : > { %v660_v24 = vpop.permute.xlu1 %659  ;;  %v714_v20 = vsel %vm458_vm6, %v656_v51, %v1067_v29  ;;  %v715_v46 = vmul.f32 %v713_v43, %v1130_v17 }
  0x98   : > { %v547_v13 = vmul.f32 %v1152_v33, %v534_v63  ;;  %v548_v14 = vmul.f32 %v1175_v42, %v535_v4  ;;  %597 = vrot.lane.b32.xlu1 %v1200_v57, %s928_s17  ;;  %595 = vrot.lane.b32.xlu0 %v1213_v16, %s928_s17  ;;  %v658_v27 = vpop.permute.xlu0 %657  ;;  %v716_v47 = vmul.f32 %v714_v20, %v1132_v18 }
  0x99   : > { %v661_v28 = vsel %vm531_vm4, %v658_v27, %v660_v24  ;;  %v662_v34 = vsel %vm531_vm4, %v660_v24, %v658_v27 }
  0x9a   : > { %v611_v21 = vsel %vm459_vm7, %v547_v13, %v1119_v8  ;;  %v612_v29 = vsel %vm460_vm8, %v548_v14, %v1121_v9  ;;  %v663_v38 = vsub.f32 %v996_v0, %v662_v34  ;;  %v664_v39 = vsub.f32 %v1002_v2, %v661_v28 }
  0x9b   : > { %v613_v40 = vmul.f32 %v611_v21, %v1188_v53  ;;  %v614_v41 = vmul.f32 %v612_v29, %v1190_v54  ;;  %v552_v9 = vpop.permute.xlu1 %551 }
  0x9c   : > { %v665_v8 = vmul.f32 %v663_v38, %v1152_v33  ;;  %v666_v48 = vmul.f32 %v664_v39, %v1175_v42  ;;  %703 = vrot.lane.b32.xlu1 %v1234_v12, %s928_s17  ;;  %701 = vrot.lane.b32.xlu0 %v1244_v32, %s928_s17  ;;  %v550_v58 = vpop.permute.xlu0 %549 }
  0x9d   : > { %v615_v17 = vadd.f32 %v613_v40, %v609_v11  ;;  %v616_v61 = vadd.f32 %v614_v41, %v610_v10  ;;  %v554_v26 = vsel %vm553_vm9, %v550_v58, %v552_v9  ;;  %v555_v18 = vsel %vm553_vm9, %v552_v9, %v550_v58 }
  0x9e   : > { %v717_v15 = vsel %vm459_vm7, %v665_v8, %v1115_v6  ;;  %v718_v62 = vsel %vm460_vm8, %v666_v48, %v1117_v7  ;;  %v556_v50 = vsub.f32 %v998_v1, %v555_v18  ;;  %v557_v51 = vsub.f32 %v1004_v3, %v554_v26 }
  0x9f   : > { %v719_v63 = vmul.f32 %v717_v15, %v1188_v53  ;;  %v720_v4 = vmul.f32 %v718_v62, %v1190_v54  ;;  %v670_v11 = vpop.permute.xlu1 %669 }
  0xa0   : > { %v569_v5 = vmul.f32 %v1259_v35, %v556_v50  ;;  %v570_v10 = vmul.f32 %v1273_v25, %v557_v51  ;;  %v668_v6 = vpop.permute.xlu0 %667 }
  0xa1   : > { %v721_v43 = vadd.f32 %v719_v63, %v715_v46  ;;  %v722_v13 = vadd.f32 %v720_v4, %v716_v47  ;;  %v671_v7 = vsel %vm553_vm9, %v668_v6, %v670_v11  ;;  %v672_v14 = vsel %vm553_vm9, %v670_v11, %v668_v6 }
  0xa2   : > { %v617_v53 = vsel %vm461_vm10, %v569_v5, %v1156_v36  ;;  %v618_v54 = vsel %vm462_vm11, %v570_v10, %v1158_v37  ;;  %v673_v24 = vsub.f32 %v996_v0, %v672_v14  ;;  %v674_v27 = vsub.f32 %v1002_v2, %v671_v7 }
  0xa3   : > { %v619_v20 = vmul.f32 %v617_v53, %v453_v55  ;;  %v620_v28 = vmul.f32 %v618_v54, %v454_v56 }
  0xa4   : > { %v675_v34 = vmul.f32 %v673_v24, %v1259_v35  ;;  %v676_v21 = vmul.f32 %v674_v27, %v1273_v25 }
  0xa5   : > { %v622_v29 = vadd.f32 %v620_v28, %v616_v61  ;;  %v621_v38 = vadd.f32 %v619_v20, %v615_v17  ;;  %v455_v20 = vld [vmem:[%s418_s21] sm:$0xff]  ;;  %v456_v28 = vld [vmem:[%s418_s21 + $0x8] sm:$0xff] }
  0xa6   : > { %v723_v39 = vsel %vm461_vm10, %v675_v34, %v1203_v59  ;;  %v724_v36 = vsel %vm462_vm11, %v676_v21, %v1205_v60 }
  0xa7   : > { %v725_v40 = vmul.f32 %v723_v39, %v453_v55  ;;  %v726_v37 = vmul.f32 %v724_v36, %v454_v56 }
  0xa9   : > { %v727_v41 = vadd.f32 %v725_v40, %v721_v43  ;;  %v728_v46 = vadd.f32 %v726_v37, %v722_v13 }
 0x102   : > { %v584_v47 = vpop.permute.xlu1 %583  ;;  %v582_v8 = vpop.permute.xlu0 %581 }
 0x103   : > { %v585_v48 = vsel %vm531_vm4, %v582_v8, %v584_v47  ;;  %v586_v9 = vsel %vm531_vm4, %v584_v47, %v582_v8 }
 0x104   : > { %v587_v58 = vsub.f32 %v1148_v31, %v586_v9  ;;  %v588_v17 = vsub.f32 %v1144_v30, %v585_v48 }
 0x106   : > { %v589_v59 = vmul.f32 %v587_v58, %v1152_v33  ;;  %v590_v60 = vmul.f32 %v588_v17, %v1175_v42  ;;  %v690_v55 = vpop.permute.xlu1 %689  ;;  %v688_v56 = vpop.permute.xlu0 %687 }
 0x107   : > { %v691_v61 = vsel %vm531_vm4, %v688_v56, %v690_v55  ;;  %v692_v26 = vsel %vm531_vm4, %v690_v55, %v688_v56 }
 0x108   : > { %v591_v18 = vadd.f32 %v589_v59, %v1090_v45  ;;  %v592_v15 = vadd.f32 %v590_v60, %v1087_v44  ;;  %v693_v31 = vsub.f32 %v1186_v52, %v692_v26  ;;  %v694_v30 = vsub.f32 %v1182_v49, %v691_v61 }
 0x10a   : > { %v695_v62 = vmul.f32 %v693_v31, %v1152_v33  ;;  %v696_v50 = vmul.f32 %v694_v30, %v1175_v42  ;;  %v598_v51 = vpop.permute.xlu1 %597  ;;  %v596_v63 = vpop.permute.xlu0 %595 }
 0x10b   : > { %v599_v4 = vsel %vm553_vm9, %v596_v63, %v598_v51  ;;  %v600_v5 = vsel %vm553_vm9, %v598_v51, %v596_v63 }
 0x10c   : > { %v697_v45 = vadd.f32 %v695_v62, %v1135_v22  ;;  %v698_v44 = vadd.f32 %v696_v50, %v1138_v23  ;;  %v601_v52 = vsub.f32 %v1213_v16, %v600_v5  ;;  %v602_v49 = vsub.f32 %v1200_v57, %v599_v4 }
 0x10e   : > { %v603_v33 = vmul.f32 %v601_v52, %v1259_v35  ;;  %v604_v42 = vmul.f32 %v602_v49, %v1273_v25  ;;  %v704_v10 = vpop.permute.xlu1 %703  ;;  %v702_v11 = vpop.permute.xlu0 %701 }
 0x10f   : > { %v705_v6 = vsel %vm553_vm9, %v702_v11, %v704_v10  ;;  %v706_v43 = vsel %vm553_vm9, %v704_v10, %v702_v11 }
 0x110   : > { %v605_v22 = vadd.f32 %v603_v33, %v591_v18  ;;  %v606_v13 = vadd.f32 %v604_v42, %v592_v15  ;;  %v707_v23 = vsub.f32 %v1244_v32, %v706_v43  ;;  %v708_v16 = vsub.f32 %v1234_v12, %v705_v6 }
 0x111   : > { %v467_v32 = vsub.f32 %v996_v0, %v998_v1  ;;  %v468_v12 = vsub.f32 %v1002_v2, %v1004_v3 }
 0x112   : > { %v623_v57 = vsub.f32 %v605_v22, %v621_v38  ;;  %v624_v7 = vsub.f32 %v606_v13, %v622_v29  ;;  %v709_v14 = vmul.f32 %v707_v23, %v1259_v35  ;;  %v710_v53 = vmul.f32 %v708_v16, %v1273_v25 }
 0x114   : > { %v711_v54 = vadd.f32 %v709_v14, %v697_v45  ;;  %v712_v24 = vadd.f32 %v710_v53, %v698_v44 }
 0x116   : > { %v729_v19 = vsub.f32 %v711_v54, %v727_v41  ;;  %v730_v27 = vsub.f32 %v712_v24, %v728_v46 }
 0x118   : > { %v731_v34 = vadd.f32 %v729_v19, %v623_v57  ;;  %v732_v35 = vadd.f32 %v730_v27, %v624_v7 }
 0x11a   : > { %v733_v21 = vmul.f32 %v731_v34, %v455_v20  ;;  %v734_v25 = vmul.f32 %v732_v35, %v456_v28 }
 0x11c   : > { %v735_v29 = vsub.f32 %v467_v32, %v733_v21  ;;  %v736_v38 = vsub.f32 %v468_v12, %v734_v25 }
 0x11e   : > { %v737_v39 = vmul.f32 %v735_v29, %v735_v29  ;;  %v738_v36 = vmul.f32 %v736_v38, %v736_v38 }
 0x120   : > { %v739_v40 = vadd.f32 %v738_v36, %v737_v39 }
 0x122   : > { %740 = vadd.xlane.f32.xlu0 %v739_v40 }
 0x1af   : > { %v741_v37 = vpop.xlane.xlu0 %740 }
 0x1b0   : > { %v742_v41 = vrot.slane %v741_v37, 4 }
 0x1b2   : > { %v743_v46 = vadd.f32 %v742_v41, %v741_v37 }
 0x1b4   : > { %v744_v47 = vrot.slane %v743_v46, 2 }
 0x1b6   : > { %v745_v8 = vadd.f32 %v744_v47, %v743_v46 }
 0x1b8   : > { %v746_v0 = vrot.slane %v745_v8, 1 }
 0x1ba   : > { %v747_v1 = vadd.f32 %v746_v0, %v745_v8 }
 0x1bc   : > { %902 = vpush %v747_v1 }
 0x1ed   : > { %s903_s24 = spop %902 }
 0x1ee   : > { %v749_v2 = vstv %s903_s24 }
 0x1ef   : > { %751 = vst.msk [vmem:[%s421_s23] sm:$0x1] %vm750_vm12, %v749_v2 }
 0x1f0 PF: > { %s18_s27 = sadd.s32 1, %s923_s27  }
 0x1f1   : > { %p15_p4 = scmp.ge.s32.totalorder %s18_s27, 4  }
 0x1f3   :  { %17 = sbr.rel (!%p15_p4) target bundleno = 1 (0x1), region = 103 }

</bundles_post_ra>
